<compile_context>
chip_gen: v7x
topology: tpu7x:2x2x1
jax: 0.10.0
libtpu: 0.0.40
codegen_flags: <defaults>
</compile_context>

<pallas_src>
import jax
import jax.numpy as jnp
from jax.experimental import pallas as pl
from jax.experimental.pallas import tpu as pltpu


def _attn_comm_decoder_kernel(
    # inputs (all fully VMEM-resident for the whole decode)
    attn_emb_ref,   # (T, 1, L)   f32  precomputed  emb @ Wa_e + b_attn
    gates_emb_ref,  # (T, 1, 8H)  f32  precomputed  relu(emb) @ Wg_e + b_g
    enc_ref,        # (L, 2H)     bf16 encoder outputs
    h0_ref,         # (1, 2H)     f32  initial hidden, packed [h_f | h_b]
    c0_ref,         # (1, 2H)     f32  initial cell,   packed [c_f | c_b]
    wa_h_ref,       # (2H, L)     bf16 attn weight^T, hidden rows
    wg_ah_ref,      # (4H, 8H)    bf16 stacked [Wg_attn ; block-diag Wg_hh], both dirs
    w_out_ref,      # (2H, Vp)    bf16 out weight^T, zero-padded to Vp lanes
    b_out_ref,      # (1, Vp)     f32  out bias, -1e30 in padded lanes
    # outputs
    logp_ref,       # (T, 1, Vp)  f32  per-step log-softmax
    attnw_ref,      # (T, 1, L)   f32  per-step attention weights
    hout_ref,       # (1, 2H)     f32  final hidden (packed)
    cout_ref,       # (1, 2H)     f32  final cell   (packed)
):
    T = attn_emb_ref.shape[0]
    H2 = h0_ref.shape[1]            # 2 * H

    def step(t, carry):
        h_prev, c_prev = carry                      # (1, 2H) f32, live in vregs
        h16 = h_prev.astype(jnp.bfloat16)

        # --- attention: softmax(precomputed_emb_term + h @ Wa_h) --------------
        attn_logits = attn_emb_ref[t] + jnp.dot(
            h16, wa_h_ref[...], preferred_element_type=jnp.float32)   # (1, L)
        m = jnp.max(attn_logits, axis=1, keepdims=True)
        e = jnp.exp(attn_logits - m)
        inv = pl.reciprocal(jnp.sum(e, axis=1, keepdims=True), approx=True)
        attn_w = e * inv
        attnw_ref[t] = attn_w
        attn_applied = jnp.dot(attn_w.astype(jnp.bfloat16), enc_ref[...],
                               preferred_element_type=jnp.float32)     # (1, 2H)

        # --- both LSTM directions, one fused state-dependent matmul ----------
        # gate column layout: [i_f i_b | f_f f_b | o_f o_b | g_f g_b], H lanes each.
        x_ah = jnp.concatenate(
            [jnp.maximum(attn_applied, 0.0), h_prev], axis=1
        ).astype(jnp.bfloat16)                                          # (1, 4H)
        gates = gates_emb_ref[t] + jnp.dot(
            x_ah, wg_ah_ref[...], preferred_element_type=jnp.float32)   # (1, 8H)
        sg = jax.nn.sigmoid(gates[:, :3 * H2])     # one EUP pass over i, f, o only
        i_g = sg[:, 0 * H2:1 * H2]
        f_g = sg[:, 1 * H2:2 * H2]
        o_g = sg[:, 2 * H2:3 * H2]
        g_g = jnp.tanh(gates[:, 3 * H2:4 * H2])
        c_new = f_g * c_prev + i_g * g_g                                # (1, 2H)
        h_new = o_g * jnp.tanh(c_new)                                   # (1, 2H)

        # --- output projection + log-softmax (vocab padded lane-dense) --------
        out_logits = jnp.dot(h_new.astype(jnp.bfloat16), w_out_ref[...],
                             preferred_element_type=jnp.float32) + b_out_ref[...]
        mv = jnp.max(out_logits, axis=1, keepdims=True)
        sh = out_logits - mv
        lse = jnp.log(jnp.sum(jnp.exp(sh), axis=1, keepdims=True))
        logp_ref[t] = sh - lse
        return h_new, c_new

    h_fin, c_fin = jax.lax.fori_loop(
        0, T, step, (h0_ref[...], c0_ref[...]), unroll=(T <= 8))
    hout_ref[...] = h_fin
    cout_ref[...] = c_fin


def prepare_params(params):
    """One-time packing of AttnCommDecoder weights for the Pallas kernel."""
    f32, bf16 = jnp.float32, jnp.bfloat16
    vecs = params["vecs"].astype(f32)
    V, E = vecs.shape
    H = params["w_hh_f"].shape[1]
    L = params["w_attn"].shape[0]

    w_attn_t = params["w_attn"].astype(f32).T                   # (E+2H, L)
    wa_e = w_attn_t[:E]                                         # (E, L) f32 (XLA precompute)
    wa_h = w_attn_t[E:].astype(bf16)                            # (2H, L)
    b_attn = params["b_attn"].astype(f32).reshape(1, L)

    dirs = (
        (params["w_ih_f"], params["w_hh_f"], params["b_ih_f"], params["b_hh_f"], 0),
        (params["w_ih_b"], params["w_hh_b"], params["b_ih_b"], params["b_hh_b"], 1),
    )
    zero_h = jnp.zeros((H, H), f32)
    wg_e_cols, wg_ah_cols, bg_cols = [], [], []
    # Packed gate order [i | f | o | g] (sigmoid gates first, tanh gate last);
    # PyTorch row order is i, f, g, o -> iterate k in (0, 1, 3, 2).
    for k in (0, 1, 3, 2):
        for w_ih, w_hh, b_ih, b_hh, d in dirs:
            ih_t = w_ih.astype(f32)[k * H:(k + 1) * H, :].T     # (E+2H, H)
            hh_t = w_hh.astype(f32)[k * H:(k + 1) * H, :].T     # (H, H)
            wg_e_cols.append(ih_t[:E])                          # (E, H)
            hh_blk = (jnp.concatenate([hh_t, zero_h], axis=0) if d == 0
                      else jnp.concatenate([zero_h, hh_t], axis=0))   # (2H, H)
            wg_ah_cols.append(jnp.concatenate([ih_t[E:], hh_blk], axis=0))  # (4H, H)
            bg_cols.append(b_ih.astype(f32)[k * H:(k + 1) * H]
                           + b_hh.astype(f32)[k * H:(k + 1) * H])
    wg_e = jnp.concatenate(wg_e_cols, axis=1)                   # (E, 8H) f32 (XLA precompute)
    wg_ah = jnp.concatenate(wg_ah_cols, axis=1).astype(bf16)    # (4H, 8H)
    b_g = jnp.concatenate(bg_cols).reshape(1, 8 * H).astype(f32)

    Vp = ((V + 127) // 128) * 128                               # lane-dense vocab
    w_out_t = params["w_out"].astype(f32).T                     # (2H, V)
    w_out_p = jnp.concatenate(
        [w_out_t, jnp.zeros((2 * H, Vp - V), f32)], axis=1).astype(bf16)
    b_out_p = jnp.concatenate(
        [params["b_out"].astype(f32), jnp.full((Vp - V,), -1e30, f32)]
    ).reshape(1, Vp)

    return dict(vecs=vecs, wa_e=wa_e, wa_h=wa_h, b_attn=b_attn,
                wg_e=wg_e, wg_ah=wg_ah, b_g=b_g,
                w_out=w_out_p, b_out=b_out_p)


@jax.jit
def attn_comm_decoder_decode(tokens, state, encoder_outputs, packed):
    """T fused decode steps.  Step t == AttnCommDecoder.forward(tokens[t], state_{t-1}).
    Returns (log_probs (T, V), (h, c) final state, attn_weights (T, L))."""
    h0, c0 = state
    T = tokens.shape[0]
    V = packed["vecs"].shape[0]
    L = packed["b_attn"].shape[1]
    Vp = packed["b_out"].shape[1]
    H2 = packed["wa_h"].shape[0]            # 2H
    H = H2 // 2
    G8 = packed["b_g"].shape[1]             # 8H

    h0p = h0.astype(jnp.float32).reshape(1, H2)        # packed [h_f | h_b]
    c0p = c0.astype(jnp.float32).reshape(1, H2)
    enc = encoder_outputs.astype(jnp.bfloat16)

    # Token-only terms are state-independent under teacher forcing: gather the
    # embedding rows and do the two token-only projections as batched M=T f32
    # matmuls here (plain XLA), feeding the kernel one precomputed row per step.
    emb_all = packed["vecs"][tokens]                                     # (T, E)
    attn_emb = (emb_all @ packed["wa_e"] + packed["b_attn"]).reshape(T, 1, L)
    gates_emb = (jax.nn.relu(emb_all) @ packed["wg_e"]
                 + packed["b_g"]).reshape(T, 1, G8)

    out_shape = (
        jax.ShapeDtypeStruct((T, 1, Vp), jnp.float32),   # logp per step
        jax.ShapeDtypeStruct((T, 1, L), jnp.float32),    # attn weights per step
        jax.ShapeDtypeStruct((1, H2), jnp.float32),      # final h (packed)
        jax.ShapeDtypeStruct((1, H2), jnp.float32),      # final c (packed)
    )
    logp_p, attn_p, hp, cp = pl.pallas_call(
        _attn_comm_decoder_kernel,
        out_shape=out_shape,
        compiler_params=pltpu.CompilerParams(
            vmem_limit_bytes=32 * 1024 * 1024),
    )(attn_emb, gates_emb, enc, h0p, c0p,
      packed["wa_h"], packed["wg_ah"], packed["w_out"], packed["b_out"])

    logp = logp_p[:, 0, :V]
    attn_w = attn_p[:, 0, :]
    h_new = hp.reshape(2, 1, H)
    c_new = cp.reshape(2, 1, H)
    return logp, (h_new, c_new), attn_w


def _reference_step(token, state, enc, p):
    """Pure-JAX f32 reference mirroring the PyTorch forward (eval-mode dropout)."""
    h0, c0 = state
    H = h0.shape[2]
    emb = p["vecs"][token]
    hidden = h0.reshape(1, 2 * H)
    attn_in = jnp.concatenate([emb, hidden], axis=1)
    attn_w = jax.nn.softmax(attn_in @ p["w_attn"].T + p["b_attn"], axis=1)
    attn_applied = attn_w @ enc
    x = jax.nn.relu(jnp.concatenate([emb, attn_applied], axis=1))

    def cell(w_ih, w_hh, b_ih, b_hh, h, c):
        g = x @ w_ih.T + b_ih + h @ w_hh.T + b_hh
        i, f, gg, o = jnp.split(g, 4, axis=1)
        c_n = jax.nn.sigmoid(f) * c + jax.nn.sigmoid(i) * jnp.tanh(gg)
        h_n = jax.nn.sigmoid(o) * jnp.tanh(c_n)
        return h_n, c_n

    hf, cf = cell(p["w_ih_f"], p["w_hh_f"], p["b_ih_f"], p["b_hh_f"], h0[0], c0[0])
    hb, cb = cell(p["w_ih_b"], p["w_hh_b"], p["b_ih_b"], p["b_hh_b"], h0[1], c0[1])
    out = jnp.concatenate([hf, hb], axis=1)
    logp = jax.nn.log_softmax(out @ p["w_out"].T + p["b_out"], axis=1)
    return logp, (jnp.stack([hf, hb]), jnp.stack([cf, cb])), attn_w


if __name__ == "__main__":
    # Small synthetic config: VOCAB=64, EMBEDDING=32, HIDDEN=32, MAX_LEN=128, T=4 steps.
    V, E, H, L, T = 64, 32, 32, 128, 4
    key = jax.random.PRNGKey(0)
    ks = jax.random.split(key, 20)

    def rn(k, shape, scale=0.1):
        return (scale * jax.random.normal(k, shape)).astype(jnp.float32)

    params = dict(
        vecs=rn(ks[0], (V, E), 1.0),
        w_attn=rn(ks[1], (L, E + 2 * H)),
        b_attn=rn(ks[2], (L,)),
        w_ih_f=rn(ks[3], (4 * H, E + 2 * H)),
        w_hh_f=rn(ks[4], (4 * H, H)),
        b_ih_f=rn(ks[5], (4 * H,)),
        b_hh_f=rn(ks[6], (4 * H,)),
        w_ih_b=rn(ks[7], (4 * H, E + 2 * H)),
        w_hh_b=rn(ks[8], (4 * H, H)),
        b_ih_b=rn(ks[9], (4 * H,)),
        b_hh_b=rn(ks[10], (4 * H,)),
        w_out=rn(ks[11], (V, 2 * H)),
        b_out=rn(ks[12], (V,)),
    )
    tokens = jnp.array([3, 17, 42, 0], dtype=jnp.int32)   # teacher-forced decode steps
    h0 = rn(ks[13], (2, 1, H))                            # (num_dirs, batch=1, H)
    c0 = rn(ks[14], (2, 1, H))
    encoder_outputs = rn(ks[15], (L, 2 * H))

    packed = prepare_params(params)        # once per model, NOT once per token step
    logp, (h_new, c_new), attn_w = attn_comm_decoder_decode(
        tokens, (h0, c0), encoder_outputs, packed)
    jax.block_until_ready((logp, h_new, c_new, attn_w))

    # --- pure-JAX reference: run the module forward T times, threading state ---
    state = (h0, c0)
    r_logps, r_attns = [], []
    for t in range(T):
        r_logp, state, r_attn = _reference_step(tokens[t:t + 1], state,
                                                encoder_outputs, params)
        r_logps.append(r_logp)
        r_attns.append(r_attn)
    r_logp = jnp.concatenate(r_logps, axis=0)
    r_attn = jnp.concatenate(r_attns, axis=0)
    r_h, r_c = state

    # bf16 in-kernel weights -> slightly looser tolerances than pure-f32.
    assert jnp.allclose(logp, r_logp, atol=2e-2, rtol=1e-2), \
        float(jnp.max(jnp.abs(logp - r_logp)))
    assert jnp.allclose(attn_w, r_attn, atol=1e-2), \
        float(jnp.max(jnp.abs(attn_w - r_attn)))
    assert jnp.allclose(h_new, r_h, atol=2e-2), \
        float(jnp.max(jnp.abs(h_new - r_h)))
    assert jnp.allclose(c_new, r_c, atol=2e-2), \
        float(jnp.max(jnp.abs(c_new - r_c)))

    print("KERNEL_OK")
</pallas_src>

<mosaic_0001>
module attributes {stable_mosaic.version = 11 : i64} {
  func.func @_attn_comm_decoder_kernel(%arg0: memref<4x1x128xf32, #tpu.memory_space<vmem>>, %arg1: memref<4x1x256xf32, #tpu.memory_space<vmem>>, %arg2: memref<128x64xbf16, #tpu.memory_space<vmem>>, %arg3: memref<1x64xf32, #tpu.memory_space<vmem>>, %arg4: memref<1x64xf32, #tpu.memory_space<vmem>>, %arg5: memref<64x128xbf16, #tpu.memory_space<vmem>>, %arg6: memref<128x256xbf16, #tpu.memory_space<vmem>>, %arg7: memref<64x128xbf16, #tpu.memory_space<vmem>>, %arg8: memref<1x128xf32, #tpu.memory_space<vmem>>, %arg9: memref<4x1x128xf32, #tpu.memory_space<vmem>>, %arg10: memref<4x1x128xf32, #tpu.memory_space<vmem>>, %arg11: memref<1x64xf32, #tpu.memory_space<vmem>>, %arg12: memref<1x64xf32, #tpu.memory_space<vmem>>) attributes {dimension_semantics = [], scalar_prefetch = 0 : i64, scratch_operands = 0 : i64, tpu.core_type = #tpu.core_type<tc>} {
    %c0 = arith.constant 0 : index
    %c0_0 = arith.constant 0 : index
    %0 = vector.load %arg3[%c0, %c0_0] : memref<1x64xf32, #tpu.memory_space<vmem>>, vector<1x64xf32>
    %c0_1 = arith.constant 0 : index
    %c0_2 = arith.constant 0 : index
    %1 = vector.load %arg4[%c0_1, %c0_2] : memref<1x64xf32, #tpu.memory_space<vmem>>, vector<1x64xf32>
    %c0_i32 = arith.constant 0 : i32
    %2 = arith.truncf %0 : vector<1x64xf32> to vector<1x64xbf16>
    %3 = arith.index_cast %c0_i32 : i32 to index
    %c0_3 = arith.constant 0 : index
    %c0_4 = arith.constant 0 : index
    %4 = vector.load %arg0[%3, %c0_3, %c0_4] : memref<4x1x128xf32, #tpu.memory_space<vmem>>, vector<1x1x128xf32>
    %5 = vector.shape_cast %4 : vector<1x1x128xf32> to vector<1x128xf32>
    %c0_5 = arith.constant 0 : index
    %c0_6 = arith.constant 0 : index
    %6 = vector.load %arg5[%c0_5, %c0_6] : memref<64x128xbf16, #tpu.memory_space<vmem>>, vector<64x128xbf16>
    %cst = arith.constant dense<0.000000e+00> : vector<1x128xf32>
    %7 = tpu.matmul %2, %6, %cst {dimension_numbers = #tpu.dot_dimension_numbers<[1], [0], [0], [1], [0, 0, 1, 1], [], []>} : vector<1x64xbf16>, vector<64x128xbf16>, vector<1x128xf32> -> vector<1x128xf32>
    %8 = arith.addf %5, %7 : vector<1x128xf32>
    %cst_7 = arith.constant dense<0xFF800000> : vector<1xf32>
    %9 = vector.multi_reduction <maximumf>, %8, %cst_7 [1] : vector<1x128xf32> to vector<1xf32>
    %10 = vector.shape_cast %9 : vector<1xf32> to vector<1x1xf32>
    %11 = vector.broadcast %10 : vector<1x1xf32> to vector<1x128xf32>
    %12 = arith.subf %8, %11 : vector<1x128xf32>
    %13 = math.exp %12 : vector<1x128xf32>
    %cst_8 = arith.constant dense<0.000000e+00> : vector<1xf32>
    %14 = vector.multi_reduction <add>, %13, %cst_8 [1] : vector<1x128xf32> to vector<1xf32>
    %15 = vector.shape_cast %14 : vector<1xf32> to vector<1x1xf32>
    %16 = tpu.reciprocal %15 {approx = true} : vector<1x1xf32> -> vector<1x1xf32>
    %17 = vector.broadcast %16 : vector<1x1xf32> to vector<1x128xf32>
    %18 = arith.mulf %13, %17 : vector<1x128xf32>
    %19 = arith.index_cast %c0_i32 : i32 to index
    %c0_9 = arith.constant 0 : index
    %c0_10 = arith.constant 0 : index
    %20 = vector.load %arg10[%19, %c0_9, %c0_10] : memref<4x1x128xf32, #tpu.memory_space<vmem>>, vector<1x1x128xf32>
    %21 = vector.shape_cast %20 : vector<1x1x128xf32> to vector<1x128xf32>
    %22 = vector.shape_cast %18 : vector<1x128xf32> to vector<1x1x128xf32>
    tpu.vector_store %arg10[%19, %c0_9, %c0_10], %22 {strides = array<i32>} : memref<4x1x128xf32, #tpu.memory_space<vmem>>, vector<1x1x128xf32>,
    %23 = arith.truncf %18 : vector<1x128xf32> to vector<1x128xbf16>
    %c0_11 = arith.constant 0 : index
    %c0_12 = arith.constant 0 : index
    %24 = vector.load %arg2[%c0_11, %c0_12] : memref<128x64xbf16, #tpu.memory_space<vmem>>, vector<128x64xbf16>
    %cst_13 = arith.constant dense<0.000000e+00> : vector<1x64xf32>
    %25 = tpu.matmul %23, %24, %cst_13 {dimension_numbers = #tpu.dot_dimension_numbers<[1], [0], [0], [1], [0, 0, 1, 1], [], []>} : vector<1x128xbf16>, vector<128x64xbf16>, vector<1x64xf32> -> vector<1x64xf32>
    %cst_14 = arith.constant 0.000000e+00 : f32
    %26 = vector.broadcast %cst_14 : f32 to vector<1x64xf32>
    %27 = arith.maximumf %25, %26 : vector<1x64xf32>
    %28 = tpu.concatenate %27, %0 in 1 : vector<1x64xf32>, vector<1x64xf32> -> vector<1x128xf32>
    %29 = arith.truncf %28 : vector<1x128xf32> to vector<1x128xbf16>
    %30 = arith.index_cast %c0_i32 : i32 to index
    %c0_15 = arith.constant 0 : index
    %c0_16 = arith.constant 0 : index
    %31 = vector.load %arg1[%30, %c0_15, %c0_16] : memref<4x1x256xf32, #tpu.memory_space<vmem>>, vector<1x1x256xf32>
    %32 = vector.shape_cast %31 : vector<1x1x256xf32> to vector<1x256xf32>
    %c0_17 = arith.constant 0 : index
    %c0_18 = arith.constant 0 : index
    %33 = vector.load %arg6[%c0_17, %c0_18] : memref<128x256xbf16, #tpu.memory_space<vmem>>, vector<128x256xbf16>
    %cst_19 = arith.constant dense<0.000000e+00> : vector<1x256xf32>
    %34 = tpu.matmul %29, %33, %cst_19 {dimension_numbers = #tpu.dot_dimension_numbers<[1], [0], [0], [1], [0, 0, 1, 1], [], []>} : vector<1x128xbf16>, vector<128x256xbf16>, vector<1x256xf32> -> vector<1x256xf32>
    %35 = arith.addf %32, %34 : vector<1x256xf32>
    %36 = vector.extract_strided_slice %35 {offsets = [0, 0], sizes = [1, 192], strides = [1, 1]} : vector<1x256xf32> to vector<1x192xf32>
    %37 = arith.negf %36 : vector<1x192xf32>
    %38 = math.exp %37 : vector<1x192xf32>
    %cst_20 = arith.constant 1.000000e+00 : f32
    %39 = vector.broadcast %cst_20 : f32 to vector<1x192xf32>
    %40 = arith.addf %39, %38 : vector<1x192xf32>
    %41 = arith.divf %39, %40 : vector<1x192xf32>
    %42 = vector.extract_strided_slice %41 {offsets = [0, 0], sizes = [1, 64], strides = [1, 1]} : vector<1x192xf32> to vector<1x64xf32>
    %43 = vector.extract_strided_slice %41 {offsets = [0, 64], sizes = [1, 64], strides = [1, 1]} : vector<1x192xf32> to vector<1x64xf32>
    %44 = vector.extract_strided_slice %41 {offsets = [0, 128], sizes = [1, 64], strides = [1, 1]} : vector<1x192xf32> to vector<1x64xf32>
    %45 = vector.extract_strided_slice %35 {offsets = [0, 192], sizes = [1, 64], strides = [1, 1]} : vector<1x256xf32> to vector<1x64xf32>
    %46 = math.tanh %45 : vector<1x64xf32>
    %47 = arith.mulf %43, %1 : vector<1x64xf32>
    %48 = arith.mulf %42, %46 : vector<1x64xf32>
    %49 = arith.addf %47, %48 : vector<1x64xf32>
    %50 = math.tanh %49 : vector<1x64xf32>
    %51 = arith.mulf %44, %50 : vector<1x64xf32>
    %52 = arith.truncf %51 : vector<1x64xf32> to vector<1x64xbf16>
    %c0_21 = arith.constant 0 : index
    %c0_22 = arith.constant 0 : index
    %53 = vector.load %arg7[%c0_21, %c0_22] : memref<64x128xbf16, #tpu.memory_space<vmem>>, vector<64x128xbf16>
    %cst_23 = arith.constant dense<0.000000e+00> : vector<1x128xf32>
    %54 = tpu.matmul %52, %53, %cst_23 {dimension_numbers = #tpu.dot_dimension_numbers<[1], [0], [0], [1], [0, 0, 1, 1], [], []>} : vector<1x64xbf16>, vector<64x128xbf16>, vector<1x128xf32> -> vector<1x128xf32>
    %c0_24 = arith.constant 0 : index
    %c0_25 = arith.constant 0 : index
    %55 = vector.load %arg8[%c0_24, %c0_25] : memref<1x128xf32, #tpu.memory_space<vmem>>, vector<1x128xf32>
    %56 = arith.addf %54, %55 : vector<1x128xf32>
    %cst_26 = arith.constant dense<0xFF800000> : vector<1xf32>
    %57 = vector.multi_reduction <maximumf>, %56, %cst_26 [1] : vector<1x128xf32> to vector<1xf32>
    %58 = vector.shape_cast %57 : vector<1xf32> to vector<1x1xf32>
    %59 = vector.broadcast %58 : vector<1x1xf32> to vector<1x128xf32>
    %60 = arith.subf %56, %59 : vector<1x128xf32>
    %61 = math.exp %60 : vector<1x128xf32>
    %cst_27 = arith.constant dense<0.000000e+00> : vector<1xf32>
    %62 = vector.multi_reduction <add>, %61, %cst_27 [1] : vector<1x128xf32> to vector<1xf32>
    %63 = vector.shape_cast %62 : vector<1xf32> to vector<1x1xf32>
    %64 = math.log %63 : vector<1x1xf32>
    %65 = vector.broadcast %64 : vector<1x1xf32> to vector<1x128xf32>
    %66 = arith.subf %60, %65 : vector<1x128xf32>
    %67 = arith.index_cast %c0_i32 : i32 to index
    %c0_28 = arith.constant 0 : index
    %c0_29 = arith.constant 0 : index
    %68 = vector.load %arg9[%67, %c0_28, %c0_29] : memref<4x1x128xf32, #tpu.memory_space<vmem>>, vector<1x1x128xf32>
    %69 = vector.shape_cast %68 : vector<1x1x128xf32> to vector<1x128xf32>
    %70 = vector.shape_cast %66 : vector<1x128xf32> to vector<1x1x128xf32>
    tpu.vector_store %arg9[%67, %c0_28, %c0_29], %70 {strides = array<i32>} : memref<4x1x128xf32, #tpu.memory_space<vmem>>, vector<1x1x128xf32>,
    %c1_i32 = arith.constant 1 : i32
    %71 = arith.truncf %51 : vector<1x64xf32> to vector<1x64xbf16>
    %72 = arith.index_cast %c1_i32 : i32 to index
    %c0_30 = arith.constant 0 : index
    %c0_31 = arith.constant 0 : index
    %73 = vector.load %arg0[%72, %c0_30, %c0_31] : memref<4x1x128xf32, #tpu.memory_space<vmem>>, vector<1x1x128xf32>
    %74 = vector.shape_cast %73 : vector<1x1x128xf32> to vector<1x128xf32>
    %c0_32 = arith.constant 0 : index
    %c0_33 = arith.constant 0 : index
    %75 = vector.load %arg5[%c0_32, %c0_33] : memref<64x128xbf16, #tpu.memory_space<vmem>>, vector<64x128xbf16>
    %cst_34 = arith.constant dense<0.000000e+00> : vector<1x128xf32>
    %76 = tpu.matmul %71, %75, %cst_34 {dimension_numbers = #tpu.dot_dimension_numbers<[1], [0], [0], [1], [0, 0, 1, 1], [], []>} : vector<1x64xbf16>, vector<64x128xbf16>, vector<1x128xf32> -> vector<1x128xf32>
    %77 = arith.addf %74, %76 : vector<1x128xf32>
    %cst_35 = arith.constant dense<0xFF800000> : vector<1xf32>
    %78 = vector.multi_reduction <maximumf>, %77, %cst_35 [1] : vector<1x128xf32> to vector<1xf32>
    %79 = vector.shape_cast %78 : vector<1xf32> to vector<1x1xf32>
    %80 = vector.broadcast %79 : vector<1x1xf32> to vector<1x128xf32>
    %81 = arith.subf %77, %80 : vector<1x128xf32>
    %82 = math.exp %81 : vector<1x128xf32>
    %cst_36 = arith.constant dense<0.000000e+00> : vector<1xf32>
    %83 = vector.multi_reduction <add>, %82, %cst_36 [1] : vector<1x128xf32> to vector<1xf32>
    %84 = vector.shape_cast %83 : vector<1xf32> to vector<1x1xf32>
    %85 = tpu.reciprocal %84 {approx = true} : vector<1x1xf32> -> vector<1x1xf32>
    %86 = vector.broadcast %85 : vector<1x1xf32> to vector<1x128xf32>
    %87 = arith.mulf %82, %86 : vector<1x128xf32>
    %88 = arith.index_cast %c1_i32 : i32 to index
    %c0_37 = arith.constant 0 : index
    %c0_38 = arith.constant 0 : index
    %89 = vector.load %arg10[%88, %c0_37, %c0_38] : memref<4x1x128xf32, #tpu.memory_space<vmem>>, vector<1x1x128xf32>
    %90 = vector.shape_cast %89 : vector<1x1x128xf32> to vector<1x128xf32>
    %91 = vector.shape_cast %87 : vector<1x128xf32> to vector<1x1x128xf32>
    tpu.vector_store %arg10[%88, %c0_37, %c0_38], %91 {strides = array<i32>} : memref<4x1x128xf32, #tpu.memory_space<vmem>>, vector<1x1x128xf32>,
    %92 = arith.truncf %87 : vector<1x128xf32> to vector<1x128xbf16>
    %c0_39 = arith.constant 0 : index
    %c0_40 = arith.constant 0 : index
    %93 = vector.load %arg2[%c0_39, %c0_40] : memref<128x64xbf16, #tpu.memory_space<vmem>>, vector<128x64xbf16>
    %cst_41 = arith.constant dense<0.000000e+00> : vector<1x64xf32>
    %94 = tpu.matmul %92, %93, %cst_41 {dimension_numbers = #tpu.dot_dimension_numbers<[1], [0], [0], [1], [0, 0, 1, 1], [], []>} : vector<1x128xbf16>, vector<128x64xbf16>, vector<1x64xf32> -> vector<1x64xf32>
    %cst_42 = arith.constant 0.000000e+00 : f32
    %95 = vector.broadcast %cst_42 : f32 to vector<1x64xf32>
    %96 = arith.maximumf %94, %95 : vector<1x64xf32>
    %97 = tpu.concatenate %96, %51 in 1 : vector<1x64xf32>, vector<1x64xf32> -> vector<1x128xf32>
    %98 = arith.truncf %97 : vector<1x128xf32> to vector<1x128xbf16>
    %99 = arith.index_cast %c1_i32 : i32 to index
    %c0_43 = arith.constant 0 : index
    %c0_44 = arith.constant 0 : index
    %100 = vector.load %arg1[%99, %c0_43, %c0_44] : memref<4x1x256xf32, #tpu.memory_space<vmem>>, vector<1x1x256xf32>
    %101 = vector.shape_cast %100 : vector<1x1x256xf32> to vector<1x256xf32>
    %c0_45 = arith.constant 0 : index
    %c0_46 = arith.constant 0 : index
    %102 = vector.load %arg6[%c0_45, %c0_46] : memref<128x256xbf16, #tpu.memory_space<vmem>>, vector<128x256xbf16>
    %cst_47 = arith.constant dense<0.000000e+00> : vector<1x256xf32>
    %103 = tpu.matmul %98, %102, %cst_47 {dimension_numbers = #tpu.dot_dimension_numbers<[1], [0], [0], [1], [0, 0, 1, 1], [], []>} : vector<1x128xbf16>, vector<128x256xbf16>, vector<1x256xf32> -> vector<1x256xf32>
    %104 = arith.addf %101, %103 : vector<1x256xf32>
    %105 = vector.extract_strided_slice %104 {offsets = [0, 0], sizes = [1, 192], strides = [1, 1]} : vector<1x256xf32> to vector<1x192xf32>
    %106 = arith.negf %105 : vector<1x192xf32>
    %107 = math.exp %106 : vector<1x192xf32>
    %cst_48 = arith.constant 1.000000e+00 : f32
    %108 = vector.broadcast %cst_48 : f32 to vector<1x192xf32>
    %109 = arith.addf %108, %107 : vector<1x192xf32>
    %110 = arith.divf %108, %109 : vector<1x192xf32>
    %111 = vector.extract_strided_slice %110 {offsets = [0, 0], sizes = [1, 64], strides = [1, 1]} : vector<1x192xf32> to vector<1x64xf32>
    %112 = vector.extract_strided_slice %110 {offsets = [0, 64], sizes = [1, 64], strides = [1, 1]} : vector<1x192xf32> to vector<1x64xf32>
    %113 = vector.extract_strided_slice %110 {offsets = [0, 128], sizes = [1, 64], strides = [1, 1]} : vector<1x192xf32> to vector<1x64xf32>
    %114 = vector.extract_strided_slice %104 {offsets = [0, 192], sizes = [1, 64], strides = [1, 1]} : vector<1x256xf32> to vector<1x64xf32>
    %115 = math.tanh %114 : vector<1x64xf32>
    %116 = arith.mulf %112, %49 : vector<1x64xf32>
    %117 = arith.mulf %111, %115 : vector<1x64xf32>
    %118 = arith.addf %116, %117 : vector<1x64xf32>
    %119 = math.tanh %118 : vector<1x64xf32>
    %120 = arith.mulf %113, %119 : vector<1x64xf32>
    %121 = arith.truncf %120 : vector<1x64xf32> to vector<1x64xbf16>
    %c0_49 = arith.constant 0 : index
    %c0_50 = arith.constant 0 : index
    %122 = vector.load %arg7[%c0_49, %c0_50] : memref<64x128xbf16, #tpu.memory_space<vmem>>, vector<64x128xbf16>
    %cst_51 = arith.constant dense<0.000000e+00> : vector<1x128xf32>
    %123 = tpu.matmul %121, %122, %cst_51 {dimension_numbers = #tpu.dot_dimension_numbers<[1], [0], [0], [1], [0, 0, 1, 1], [], []>} : vector<1x64xbf16>, vector<64x128xbf16>, vector<1x128xf32> -> vector<1x128xf32>
    %c0_52 = arith.constant 0 : index
    %c0_53 = arith.constant 0 : index
    %124 = vector.load %arg8[%c0_52, %c0_53] : memref<1x128xf32, #tpu.memory_space<vmem>>, vector<1x128xf32>
    %125 = arith.addf %123, %124 : vector<1x128xf32>
    %cst_54 = arith.constant dense<0xFF800000> : vector<1xf32>
    %126 = vector.multi_reduction <maximumf>, %125, %cst_54 [1] : vector<1x128xf32> to vector<1xf32>
    %127 = vector.shape_cast %126 : vector<1xf32> to vector<1x1xf32>
    %128 = vector.broadcast %127 : vector<1x1xf32> to vector<1x128xf32>
    %129 = arith.subf %125, %128 : vector<1x128xf32>
    %130 = math.exp %129 : vector<1x128xf32>
    %cst_55 = arith.constant dense<0.000000e+00> : vector<1xf32>
    %131 = vector.multi_reduction <add>, %130, %cst_55 [1] : vector<1x128xf32> to vector<1xf32>
    %132 = vector.shape_cast %131 : vector<1xf32> to vector<1x1xf32>
    %133 = math.log %132 : vector<1x1xf32>
    %134 = vector.broadcast %133 : vector<1x1xf32> to vector<1x128xf32>
    %135 = arith.subf %129, %134 : vector<1x128xf32>
    %136 = arith.index_cast %c1_i32 : i32 to index
    %c0_56 = arith.constant 0 : index
    %c0_57 = arith.constant 0 : index
    %137 = vector.load %arg9[%136, %c0_56, %c0_57] : memref<4x1x128xf32, #tpu.memory_space<vmem>>, vector<1x1x128xf32>
    %138 = vector.shape_cast %137 : vector<1x1x128xf32> to vector<1x128xf32>
    %139 = vector.shape_cast %135 : vector<1x128xf32> to vector<1x1x128xf32>
    tpu.vector_store %arg9[%136, %c0_56, %c0_57], %139 {strides = array<i32>} : memref<4x1x128xf32, #tpu.memory_space<vmem>>, vector<1x1x128xf32>,
    %c2_i32 = arith.constant 2 : i32
    %140 = arith.truncf %120 : vector<1x64xf32> to vector<1x64xbf16>
    %141 = arith.index_cast %c2_i32 : i32 to index
    %c0_58 = arith.constant 0 : index
    %c0_59 = arith.constant 0 : index
    %142 = vector.load %arg0[%141, %c0_58, %c0_59] : memref<4x1x128xf32, #tpu.memory_space<vmem>>, vector<1x1x128xf32>
    %143 = vector.shape_cast %142 : vector<1x1x128xf32> to vector<1x128xf32>
    %c0_60 = arith.constant 0 : index
    %c0_61 = arith.constant 0 : index
    %144 = vector.load %arg5[%c0_60, %c0_61] : memref<64x128xbf16, #tpu.memory_space<vmem>>, vector<64x128xbf16>
    %cst_62 = arith.constant dense<0.000000e+00> : vector<1x128xf32>
    %145 = tpu.matmul %140, %144, %cst_62 {dimension_numbers = #tpu.dot_dimension_numbers<[1], [0], [0], [1], [0, 0, 1, 1], [], []>} : vector<1x64xbf16>, vector<64x128xbf16>, vector<1x128xf32> -> vector<1x128xf32>
    %146 = arith.addf %143, %145 : vector<1x128xf32>
    %cst_63 = arith.constant dense<0xFF800000> : vector<1xf32>
    %147 = vector.multi_reduction <maximumf>, %146, %cst_63 [1] : vector<1x128xf32> to vector<1xf32>
    %148 = vector.shape_cast %147 : vector<1xf32> to vector<1x1xf32>
    %149 = vector.broadcast %148 : vector<1x1xf32> to vector<1x128xf32>
    %150 = arith.subf %146, %149 : vector<1x128xf32>
    %151 = math.exp %150 : vector<1x128xf32>
    %cst_64 = arith.constant dense<0.000000e+00> : vector<1xf32>
    %152 = vector.multi_reduction <add>, %151, %cst_64 [1] : vector<1x128xf32> to vector<1xf32>
    %153 = vector.shape_cast %152 : vector<1xf32> to vector<1x1xf32>
    %154 = tpu.reciprocal %153 {approx = true} : vector<1x1xf32> -> vector<1x1xf32>
    %155 = vector.broadcast %154 : vector<1x1xf32> to vector<1x128xf32>
    %156 = arith.mulf %151, %155 : vector<1x128xf32>
    %157 = arith.index_cast %c2_i32 : i32 to index
    %c0_65 = arith.constant 0 : index
    %c0_66 = arith.constant 0 : index
    %158 = vector.load %arg10[%157, %c0_65, %c0_66] : memref<4x1x128xf32, #tpu.memory_space<vmem>>, vector<1x1x128xf32>
    %159 = vector.shape_cast %158 : vector<1x1x128xf32> to vector<1x128xf32>
    %160 = vector.shape_cast %156 : vector<1x128xf32> to vector<1x1x128xf32>
    tpu.vector_store %arg10[%157, %c0_65, %c0_66], %160 {strides = array<i32>} : memref<4x1x128xf32, #tpu.memory_space<vmem>>, vector<1x1x128xf32>,
    %161 = arith.truncf %156 : vector<1x128xf32> to vector<1x128xbf16>
    %c0_67 = arith.constant 0 : index
    %c0_68 = arith.constant 0 : index
    %162 = vector.load %arg2[%c0_67, %c0_68] : memref<128x64xbf16, #tpu.memory_space<vmem>>, vector<128x64xbf16>
    %cst_69 = arith.constant dense<0.000000e+00> : vector<1x64xf32>
    %163 = tpu.matmul %161, %162, %cst_69 {dimension_numbers = #tpu.dot_dimension_numbers<[1], [0], [0], [1], [0, 0, 1, 1], [], []>} : vector<1x128xbf16>, vector<128x64xbf16>, vector<1x64xf32> -> vector<1x64xf32>
    %cst_70 = arith.constant 0.000000e+00 : f32
    %164 = vector.broadcast %cst_70 : f32 to vector<1x64xf32>
    %165 = arith.maximumf %163, %164 : vector<1x64xf32>
    %166 = tpu.concatenate %165, %120 in 1 : vector<1x64xf32>, vector<1x64xf32> -> vector<1x128xf32>
    %167 = arith.truncf %166 : vector<1x128xf32> to vector<1x128xbf16>
    %168 = arith.index_cast %c2_i32 : i32 to index
    %c0_71 = arith.constant 0 : index
    %c0_72 = arith.constant 0 : index
    %169 = vector.load %arg1[%168, %c0_71, %c0_72] : memref<4x1x256xf32, #tpu.memory_space<vmem>>, vector<1x1x256xf32>
    %170 = vector.shape_cast %169 : vector<1x1x256xf32> to vector<1x256xf32>
    %c0_73 = arith.constant 0 : index
    %c0_74 = arith.constant 0 : index
    %171 = vector.load %arg6[%c0_73, %c0_74] : memref<128x256xbf16, #tpu.memory_space<vmem>>, vector<128x256xbf16>
    %cst_75 = arith.constant dense<0.000000e+00> : vector<1x256xf32>
    %172 = tpu.matmul %167, %171, %cst_75 {dimension_numbers = #tpu.dot_dimension_numbers<[1], [0], [0], [1], [0, 0, 1, 1], [], []>} : vector<1x128xbf16>, vector<128x256xbf16>, vector<1x256xf32> -> vector<1x256xf32>
    %173 = arith.addf %170, %172 : vector<1x256xf32>
    %174 = vector.extract_strided_slice %173 {offsets = [0, 0], sizes = [1, 192], strides = [1, 1]} : vector<1x256xf32> to vector<1x192xf32>
    %175 = arith.negf %174 : vector<1x192xf32>
    %176 = math.exp %175 : vector<1x192xf32>
    %cst_76 = arith.constant 1.000000e+00 : f32
    %177 = vector.broadcast %cst_76 : f32 to vector<1x192xf32>
    %178 = arith.addf %177, %176 : vector<1x192xf32>
    %179 = arith.divf %177, %178 : vector<1x192xf32>
    %180 = vector.extract_strided_slice %179 {offsets = [0, 0], sizes = [1, 64], strides = [1, 1]} : vector<1x192xf32> to vector<1x64xf32>
    %181 = vector.extract_strided_slice %179 {offsets = [0, 64], sizes = [1, 64], strides = [1, 1]} : vector<1x192xf32> to vector<1x64xf32>
    %182 = vector.extract_strided_slice %179 {offsets = [0, 128], sizes = [1, 64], strides = [1, 1]} : vector<1x192xf32> to vector<1x64xf32>
    %183 = vector.extract_strided_slice %173 {offsets = [0, 192], sizes = [1, 64], strides = [1, 1]} : vector<1x256xf32> to vector<1x64xf32>
    %184 = math.tanh %183 : vector<1x64xf32>
    %185 = arith.mulf %181, %118 : vector<1x64xf32>
    %186 = arith.mulf %180, %184 : vector<1x64xf32>
    %187 = arith.addf %185, %186 : vector<1x64xf32>
    %188 = math.tanh %187 : vector<1x64xf32>
    %189 = arith.mulf %182, %188 : vector<1x64xf32>
    %190 = arith.truncf %189 : vector<1x64xf32> to vector<1x64xbf16>
    %c0_77 = arith.constant 0 : index
    %c0_78 = arith.constant 0 : index
    %191 = vector.load %arg7[%c0_77, %c0_78] : memref<64x128xbf16, #tpu.memory_space<vmem>>, vector<64x128xbf16>
    %cst_79 = arith.constant dense<0.000000e+00> : vector<1x128xf32>
    %192 = tpu.matmul %190, %191, %cst_79 {dimension_numbers = #tpu.dot_dimension_numbers<[1], [0], [0], [1], [0, 0, 1, 1], [], []>} : vector<1x64xbf16>, vector<64x128xbf16>, vector<1x128xf32> -> vector<1x128xf32>
    %c0_80 = arith.constant 0 : index
    %c0_81 = arith.constant 0 : index
    %193 = vector.load %arg8[%c0_80, %c0_81] : memref<1x128xf32, #tpu.memory_space<vmem>>, vector<1x128xf32>
    %194 = arith.addf %192, %193 : vector<1x128xf32>
    %cst_82 = arith.constant dense<0xFF800000> : vector<1xf32>
    %195 = vector.multi_reduction <maximumf>, %194, %cst_82 [1] : vector<1x128xf32> to vector<1xf32>
    %196 = vector.shape_cast %195 : vector<1xf32> to vector<1x1xf32>
    %197 = vector.broadcast %196 : vector<1x1xf32> to vector<1x128xf32>
    %198 = arith.subf %194, %197 : vector<1x128xf32>
    %199 = math.exp %198 : vector<1x128xf32>
    %cst_83 = arith.constant dense<0.000000e+00> : vector<1xf32>
    %200 = vector.multi_reduction <add>, %199, %cst_83 [1] : vector<1x128xf32> to vector<1xf32>
    %201 = vector.shape_cast %200 : vector<1xf32> to vector<1x1xf32>
    %202 = math.log %201 : vector<1x1xf32>
    %203 = vector.broadcast %202 : vector<1x1xf32> to vector<1x128xf32>
    %204 = arith.subf %198, %203 : vector<1x128xf32>
    %205 = arith.index_cast %c2_i32 : i32 to index
    %c0_84 = arith.constant 0 : index
    %c0_85 = arith.constant 0 : index
    %206 = vector.load %arg9[%205, %c0_84, %c0_85] : memref<4x1x128xf32, #tpu.memory_space<vmem>>, vector<1x1x128xf32>
    %207 = vector.shape_cast %206 : vector<1x1x128xf32> to vector<1x128xf32>
    %208 = vector.shape_cast %204 : vector<1x128xf32> to vector<1x1x128xf32>
    tpu.vector_store %arg9[%205, %c0_84, %c0_85], %208 {strides = array<i32>} : memref<4x1x128xf32, #tpu.memory_space<vmem>>, vector<1x1x128xf32>,
    %c3_i32 = arith.constant 3 : i32
    %209 = arith.truncf %189 : vector<1x64xf32> to vector<1x64xbf16>
    %210 = arith.index_cast %c3_i32 : i32 to index
    %c0_86 = arith.constant 0 : index
    %c0_87 = arith.constant 0 : index
    %211 = vector.load %arg0[%210, %c0_86, %c0_87] : memref<4x1x128xf32, #tpu.memory_space<vmem>>, vector<1x1x128xf32>
    %212 = vector.shape_cast %211 : vector<1x1x128xf32> to vector<1x128xf32>
    %c0_88 = arith.constant 0 : index
    %c0_89 = arith.constant 0 : index
    %213 = vector.load %arg5[%c0_88, %c0_89] : memref<64x128xbf16, #tpu.memory_space<vmem>>, vector<64x128xbf16>
    %cst_90 = arith.constant dense<0.000000e+00> : vector<1x128xf32>
    %214 = tpu.matmul %209, %213, %cst_90 {dimension_numbers = #tpu.dot_dimension_numbers<[1], [0], [0], [1], [0, 0, 1, 1], [], []>} : vector<1x64xbf16>, vector<64x128xbf16>, vector<1x128xf32> -> vector<1x128xf32>
    %215 = arith.addf %212, %214 : vector<1x128xf32>
    %cst_91 = arith.constant dense<0xFF800000> : vector<1xf32>
    %216 = vector.multi_reduction <maximumf>, %215, %cst_91 [1] : vector<1x128xf32> to vector<1xf32>
    %217 = vector.shape_cast %216 : vector<1xf32> to vector<1x1xf32>
    %218 = vector.broadcast %217 : vector<1x1xf32> to vector<1x128xf32>
    %219 = arith.subf %215, %218 : vector<1x128xf32>
    %220 = math.exp %219 : vector<1x128xf32>
    %cst_92 = arith.constant dense<0.000000e+00> : vector<1xf32>
    %221 = vector.multi_reduction <add>, %220, %cst_92 [1] : vector<1x128xf32> to vector<1xf32>
    %222 = vector.shape_cast %221 : vector<1xf32> to vector<1x1xf32>
    %223 = tpu.reciprocal %222 {approx = true} : vector<1x1xf32> -> vector<1x1xf32>
    %224 = vector.broadcast %223 : vector<1x1xf32> to vector<1x128xf32>
    %225 = arith.mulf %220, %224 : vector<1x128xf32>
    %226 = arith.index_cast %c3_i32 : i32 to index
    %c0_93 = arith.constant 0 : index
    %c0_94 = arith.constant 0 : index
    %227 = vector.load %arg10[%226, %c0_93, %c0_94] : memref<4x1x128xf32, #tpu.memory_space<vmem>>, vector<1x1x128xf32>
    %228 = vector.shape_cast %227 : vector<1x1x128xf32> to vector<1x128xf32>
    %229 = vector.shape_cast %225 : vector<1x128xf32> to vector<1x1x128xf32>
    tpu.vector_store %arg10[%226, %c0_93, %c0_94], %229 {strides = array<i32>} : memref<4x1x128xf32, #tpu.memory_space<vmem>>, vector<1x1x128xf32>,
    %230 = arith.truncf %225 : vector<1x128xf32> to vector<1x128xbf16>
    %c0_95 = arith.constant 0 : index
    %c0_96 = arith.constant 0 : index
    %231 = vector.load %arg2[%c0_95, %c0_96] : memref<128x64xbf16, #tpu.memory_space<vmem>>, vector<128x64xbf16>
    %cst_97 = arith.constant dense<0.000000e+00> : vector<1x64xf32>
    %232 = tpu.matmul %230, %231, %cst_97 {dimension_numbers = #tpu.dot_dimension_numbers<[1], [0], [0], [1], [0, 0, 1, 1], [], []>} : vector<1x128xbf16>, vector<128x64xbf16>, vector<1x64xf32> -> vector<1x64xf32>
    %cst_98 = arith.constant 0.000000e+00 : f32
    %233 = vector.broadcast %cst_98 : f32 to vector<1x64xf32>
    %234 = arith.maximumf %232, %233 : vector<1x64xf32>
    %235 = tpu.concatenate %234, %189 in 1 : vector<1x64xf32>, vector<1x64xf32> -> vector<1x128xf32>
    %236 = arith.truncf %235 : vector<1x128xf32> to vector<1x128xbf16>
    %237 = arith.index_cast %c3_i32 : i32 to index
    %c0_99 = arith.constant 0 : index
    %c0_100 = arith.constant 0 : index
    %238 = vector.load %arg1[%237, %c0_99, %c0_100] : memref<4x1x256xf32, #tpu.memory_space<vmem>>, vector<1x1x256xf32>
    %239 = vector.shape_cast %238 : vector<1x1x256xf32> to vector<1x256xf32>
    %c0_101 = arith.constant 0 : index
    %c0_102 = arith.constant 0 : index
    %240 = vector.load %arg6[%c0_101, %c0_102] : memref<128x256xbf16, #tpu.memory_space<vmem>>, vector<128x256xbf16>
    %cst_103 = arith.constant dense<0.000000e+00> : vector<1x256xf32>
    %241 = tpu.matmul %236, %240, %cst_103 {dimension_numbers = #tpu.dot_dimension_numbers<[1], [0], [0], [1], [0, 0, 1, 1], [], []>} : vector<1x128xbf16>, vector<128x256xbf16>, vector<1x256xf32> -> vector<1x256xf32>
    %242 = arith.addf %239, %241 : vector<1x256xf32>
    %243 = vector.extract_strided_slice %242 {offsets = [0, 0], sizes = [1, 192], strides = [1, 1]} : vector<1x256xf32> to vector<1x192xf32>
    %244 = arith.negf %243 : vector<1x192xf32>
    %245 = math.exp %244 : vector<1x192xf32>
    %cst_104 = arith.constant 1.000000e+00 : f32
    %246 = vector.broadcast %cst_104 : f32 to vector<1x192xf32>
    %247 = arith.addf %246, %245 : vector<1x192xf32>
    %248 = arith.divf %246, %247 : vector<1x192xf32>
    %249 = vector.extract_strided_slice %248 {offsets = [0, 0], sizes = [1, 64], strides = [1, 1]} : vector<1x192xf32> to vector<1x64xf32>
    %250 = vector.extract_strided_slice %248 {offsets = [0, 64], sizes = [1, 64], strides = [1, 1]} : vector<1x192xf32> to vector<1x64xf32>
    %251 = vector.extract_strided_slice %248 {offsets = [0, 128], sizes = [1, 64], strides = [1, 1]} : vector<1x192xf32> to vector<1x64xf32>
    %252 = vector.extract_strided_slice %242 {offsets = [0, 192], sizes = [1, 64], strides = [1, 1]} : vector<1x256xf32> to vector<1x64xf32>
    %253 = math.tanh %252 : vector<1x64xf32>
    %254 = arith.mulf %250, %187 : vector<1x64xf32>
    %255 = arith.mulf %249, %253 : vector<1x64xf32>
    %256 = arith.addf %254, %255 : vector<1x64xf32>
    %257 = math.tanh %256 : vector<1x64xf32>
    %258 = arith.mulf %251, %257 : vector<1x64xf32>
    %259 = arith.truncf %258 : vector<1x64xf32> to vector<1x64xbf16>
    %c0_105 = arith.constant 0 : index
    %c0_106 = arith.constant 0 : index
    %260 = vector.load %arg7[%c0_105, %c0_106] : memref<64x128xbf16, #tpu.memory_space<vmem>>, vector<64x128xbf16>
    %cst_107 = arith.constant dense<0.000000e+00> : vector<1x128xf32>
    %261 = tpu.matmul %259, %260, %cst_107 {dimension_numbers = #tpu.dot_dimension_numbers<[1], [0], [0], [1], [0, 0, 1, 1], [], []>} : vector<1x64xbf16>, vector<64x128xbf16>, vector<1x128xf32> -> vector<1x128xf32>
    %c0_108 = arith.constant 0 : index
    %c0_109 = arith.constant 0 : index
    %262 = vector.load %arg8[%c0_108, %c0_109] : memref<1x128xf32, #tpu.memory_space<vmem>>, vector<1x128xf32>
    %263 = arith.addf %261, %262 : vector<1x128xf32>
    %cst_110 = arith.constant dense<0xFF800000> : vector<1xf32>
    %264 = vector.multi_reduction <maximumf>, %263, %cst_110 [1] : vector<1x128xf32> to vector<1xf32>
    %265 = vector.shape_cast %264 : vector<1xf32> to vector<1x1xf32>
    %266 = vector.broadcast %265 : vector<1x1xf32> to vector<1x128xf32>
    %267 = arith.subf %263, %266 : vector<1x128xf32>
    %268 = math.exp %267 : vector<1x128xf32>
    %cst_111 = arith.constant dense<0.000000e+00> : vector<1xf32>
    %269 = vector.multi_reduction <add>, %268, %cst_111 [1] : vector<1x128xf32> to vector<1xf32>
    %270 = vector.shape_cast %269 : vector<1xf32> to vector<1x1xf32>
    %271 = math.log %270 : vector<1x1xf32>
    %272 = vector.broadcast %271 : vector<1x1xf32> to vector<1x128xf32>
    %273 = arith.subf %267, %272 : vector<1x128xf32>
    %274 = arith.index_cast %c3_i32 : i32 to index
    %c0_112 = arith.constant 0 : index
    %c0_113 = arith.constant 0 : index
    %275 = vector.load %arg9[%274, %c0_112, %c0_113] : memref<4x1x128xf32, #tpu.memory_space<vmem>>, vector<1x1x128xf32>
    %276 = vector.shape_cast %275 : vector<1x1x128xf32> to vector<1x128xf32>
    %277 = vector.shape_cast %273 : vector<1x128xf32> to vector<1x1x128xf32>
    tpu.vector_store %arg9[%274, %c0_112, %c0_113], %277 {strides = array<i32>} : memref<4x1x128xf32, #tpu.memory_space<vmem>>, vector<1x1x128xf32>,
    %c4_i32 = arith.constant 4 : i32
    %c0_114 = arith.constant 0 : index
    %c0_115 = arith.constant 0 : index
    %278 = vector.load %arg11[%c0_114, %c0_115] : memref<1x64xf32, #tpu.memory_space<vmem>>, vector<1x64xf32>
    tpu.vector_store %arg11[%c0_114, %c0_115], %258 {strides = array<i32>} : memref<1x64xf32, #tpu.memory_space<vmem>>, vector<1x64xf32>,
    %c0_116 = arith.constant 0 : index
    %c0_117 = arith.constant 0 : index
    %279 = vector.load %arg12[%c0_116, %c0_117] : memref<1x64xf32, #tpu.memory_space<vmem>>, vector<1x64xf32>
    tpu.vector_store %arg12[%c0_116, %c0_117], %256 {strides = array<i32>} : memref<1x64xf32, #tpu.memory_space<vmem>>, vector<1x64xf32>,
    return
  }
}

</mosaic_0001>

<bundles_post_ra>
// kernel: attn_comm_decoder_decode.1
= control target key start
LH: loop header
LB: loop body
LE: loop exit
PB: predicated region body
PF: predicated region fallthrough
CT: control target
= control target key end

     0   :  { %18 = vsyncpa [#allocation3], 0  ;;  %v2653_v1 = vmov 0.0   ;;  %vm2654_vm0 = vmmov 0   ;;  %vm75_vm1 = vcmask 523264   ;;  %s3343_s0 = inlined_call_operand.vmem [shape: f32[4,1,128], index: 0, kind: input, shape index: {}]   ;;  %s3344_s1 = inlined_call_operand.vmem [shape: f32[4,1,256], index: 1, kind: input, shape index: {}]   ;;  %s3345_s2 = inlined_call_operand.vmem [shape: bf16[128,64], index: 2, kind: input, shape index: {}]   ;;  %s3346_s3 = inlined_call_operand.vmem [shape: f32[1,64], index: 3, kind: input, shape index: {}]   ;;  %s3347_s4 = inlined_call_operand.vmem [shape: f32[1,64], index: 4, kind: input, shape index: {}]   ;;  %s3348_s5 = inlined_call_operand.vmem [shape: bf16[64,128], index: 5, kind: input, shape index: {}]   ;;  %s3349_s6 = inlined_call_operand.vmem [shape: bf16[128,256], index: 6, kind: input, shape index: {}]   ;;  %s3350_s7 = inlined_call_operand.vmem [shape: bf16[64,128], index: 7, kind: input, shape index: {}]   ;;  %s3351_s8 = inlined_call_operand.vmem [shape: f32[1,128], index: 8, kind: input, shape index: {}]   ;;  %s3352_s9 = inlined_call_operand.hbm [shape: f32[4,1,128], index: 9, kind: output, shape index: {0}]   ;;  %s3353_s10 = inlined_call_operand.hbm [shape: f32[4,1,128], index: 10, kind: output, shape index: {1}]   ;;  %s3354_s11 = inlined_call_operand.vmem [shape: f32[1,64], index: 11, kind: output, shape index: {2}]   ;;  %s3355_s12 = inlined_call_operand.vmem [shape: f32[1,64], index: 12, kind: output, shape index: {3}]  }
   0x1   :  { %v2429_v0 = vld [vmem:[%s3348_s5] sm:$0xff]   ;;  %2244 = vmatprep.subr.bf16.mxu0 %v2653_v1  ;;  %2256 = vmatprep.subr.bf16.mxu1 %v2653_v1  ;;  %v2430_v2 = vld [vmem:[%s3348_s5 + $0x8] sm:$0xff]   ;;  %v2431_v3 = vld [vmem:[%s3348_s5 + $0x10] sm:$0xff]  }
   0x2   :  { %2245 = vmatpush3.bf16.msra.mxu0 %v2429_v0  ;;  %2252 = vmatprep.mubr.msk.bf16.mxu0 %vm2654_vm0, %v2653_v1  ;;  %v2432_v4 = vld [vmem:[%s3348_s5 + $0x18] sm:$0xff]   ;;  %v39_v5 = vld [vmem:[%s3346_s3] sm:$0x1] }
   0x3   :  { %2246 = vmatprep.subr.bf16.mxu0 %v2653_v1  ;;  %2272 = vmatprep.mubr.msk.bf16.mxu1 %vm2654_vm0, %v2653_v1  ;;  %v41_v6 = vpack.c.bf16 %v39_v5, %v39_v5 }
   0x6   :  { %2247 = vmatpush3.bf16.msra.mxu0 %v2430_v2 }
   0x7   :  { %2248 = vmatprep.subr.bf16.mxu0 %v2653_v1 }
   0xa   :  { %2249 = vmatpush3.bf16.msra.mxu0 %v2431_v3 }
   0xb   :  { %2250 = vmatprep.subr.bf16.mxu0 %v2653_v1 }
   0xe   :  { %2251 = vmatpush3.bf16.msra.mxu0 %v2432_v4 }
  0x11   :  { %2253 = vmatmul.mubr.msk.bf16.vlgmr.msra.gmra.mrb[0].mxu0 %vm75_vm1, %v41_v6 }
  0x12   :  { %19 = vsyncpa [#allocation5], 0  ;;  %v42_v7 = vld [vmem:[%s3343_s0] sm:$0x1]  ;;  %vm120_vm2 = vcmask 1040384   ;;  %v2434_v15 = vld [vmem:[%s3345_s2 + $0x8] sm:$0xff]   ;;  %v240_v27 = vlaneseq }
  0x13   :  { %v2433_v14 = vld [vmem:[%s3345_s2] sm:$0xff]   ;;  %v2435_v16 = vld [vmem:[%s3345_s2 + $0x10] sm:$0xff]   ;;  %v2436_v17 = vld [vmem:[%s3345_s2 + $0x18] sm:$0xff]   ;;  %s2655_s21 = smov 64   ;;  %v2656_v51 = vmov 0   ;;  %vm1971_vm3 = vcmask 516096  }
  0x14   :  { %2257 = vmatpush3.bf16.msra.mxu1 %v2433_v14  ;;  %v2437_v23 = vld [vmem:[%s3345_s2 + $0x20] sm:$0xff]   ;;  %v2438_v24 = vld [vmem:[%s3345_s2 + $0x28] sm:$0xff]   ;;  %v2439_v25 = vld [vmem:[%s3345_s2 + $0x30] sm:$0xff]   ;;  %v241_v31 = vshrl.u32 %v240_v27, 7  ;;  %378 = vmatprep.mubr.bf16.mxu0 %v2656_v51  ;;  %v2657_v61 = vmov 1966171168  }
  0x15   :  { %2258 = vmatprep.subr.bf16.mxu1 %v2653_v1  ;;  %v2440_v26 = vld [vmem:[%s3345_s2 + $0x38] sm:$0xff]   ;;  %v2792_v28 = vld [vmem:[%s3349_s6] ss:$8 sps:$4 sm:$0xff]   ;;  %v2797_v29 = vld [vmem:[%s3349_s6 + $0x4] ss:$8 sps:$4 sm:$0xff]   ;;  %v391_v62 = vunpack.c.l.s4 %v2657_v61 }
  0x16   :  { %v2802_v30 = vld [vmem:[%s3349_s6 + $0x14] ss:$8 sps:$4 sm:$0xff]   ;;  %346 = vmatprep.subr.bf16.mxu0 %v2797_v29  ;;  %v2805_v32 = vsub.s32 0, %v241_v31  ;;  %v2811_v33 = vld [vmem:[%s3349_s6 + $0x10] ss:$8 sps:$4 sm:$0xff]  }
  0x17   :  { %347 = vmatpush1.bf16.msra.mxu0 %v2792_v28  ;;  %v2817_v34 = vld [vmem:[%s3349_s6 + $0x24] ss:$8 sps:$4 sm:$0xff]   ;;  %v2825_v36 = vld [vmem:[%s3349_s6 + $0x20] ss:$8 sps:$4 sm:$0xff]   ;;  %v2831_v37 = vld [vmem:[%s3349_s6 + $0x34] ss:$8 sps:$4 sm:$0xff]   ;;  %v392_v63 = vunpack.c.0.s8 %v391_v62 }
  0x18   :  { %2259 = vmatpush3.bf16.msra.mxu1 %v2434_v15  ;;  %348 = vmatprep.subr.bf16.mxu0 %v2802_v30  ;;  %v243_v35 = vrot.slane %v39_v5, %v2805_v32  ;;  %v2837_v38 = vld [vmem:[%s3349_s6 + $0x30] ss:$8 sps:$4 sm:$0xff]   ;;  %v2843_v39 = vld [vmem:[%s3349_s6 + $0x44] ss:$8 sps:$4 sm:$0xff]   ;;  %v2849_v40 = vld [vmem:[%s3349_s6 + $0x40] ss:$8 sps:$4 sm:$0xff]  }
  0x19   :  { %2260 = vmatprep.subr.bf16.mxu1 %v2653_v1  ;;  %v2855_v41 = vld [vmem:[%s3349_s6 + $0x54] ss:$8 sps:$4 sm:$0xff]   ;;  %v2861_v42 = vld [vmem:[%s3349_s6 + $0x50] ss:$8 sps:$4 sm:$0xff]   ;;  %v2867_v43 = vld [vmem:[%s3349_s6 + $0x64] ss:$8 sps:$4 sm:$0xff]   ;;  %v2900_v0 = vsub.s32 %v392_v63, %v241_v31 }
  0x1a   :  { %244 = vrot.lane.b32.xlu1 %v243_v35, %s2655_s21  ;;  %v2873_v44 = vld [vmem:[%s3349_s6 + $0x60] ss:$8 sps:$4 sm:$0xff]   ;;  %v2882_v49 = vld [vmem:[%s3349_s6 + $0x74] ss:$8 sps:$4 sm:$0xff]   ;;  %v2887_v50 = vld [vmem:[%s3349_s6 + $0x70] ss:$8 sps:$4 sm:$0xff]  }
  0x1b   :  { %349 = vmatpush1.bf16.msra.mxu0 %v2811_v33  ;;  %v40_v52 = vld [vmem:[%s3347_s4] sm:$0x1]  ;;  %v2471_v31 = vld [vmem:[%s3350_s7 + $0x18] sm:$0xff]  }
  0x1c   :  { %2261 = vmatpush3.bf16.msra.mxu1 %v2435_v16  ;;  %350 = vmatprep.subr.bf16.mxu0 %v2817_v34  ;;  %v2472_v35 = vld [vmem:[%s3348_s5 + $0x18] sm:$0xff]  }
  0x1d   :  { %2262 = vmatprep.subr.bf16.mxu1 %v2653_v1 }
  0x1f   :  { %351 = vmatpush1.bf16.msra.mxu0 %v2825_v36 }
  0x20   :  { %2263 = vmatpush3.bf16.msra.mxu1 %v2436_v17  ;;  %352 = vmatprep.subr.bf16.mxu0 %v2831_v37 }
  0x21   :  { %2264 = vmatprep.subr.bf16.mxu1 %v2653_v1 }
  0x23   :  { %353 = vmatpush1.bf16.msra.mxu0 %v2837_v38 }
  0x24   :  { %2265 = vmatpush3.bf16.msra.mxu1 %v2437_v23  ;;  %354 = vmatprep.subr.bf16.mxu0 %v2843_v39  ;;  %v2469_v23 = vld [vmem:[%s3350_s7 + $0x10] sm:$0xff]  }
  0x25   :  { %2266 = vmatprep.subr.bf16.mxu1 %v2653_v1 }
  0x27   :  { %355 = vmatpush1.bf16.msra.mxu0 %v2849_v40 }
  0x28   :  { %2267 = vmatpush3.bf16.msra.mxu1 %v2438_v24  ;;  %356 = vmatprep.subr.bf16.mxu0 %v2855_v41  ;;  %v2470_v24 = vld [vmem:[%s3348_s5 + $0x10] sm:$0xff]  }
  0x29   :  { %2268 = vmatprep.subr.bf16.mxu1 %v2653_v1 }
  0x2b   :  { %357 = vmatpush1.bf16.msra.mxu0 %v2861_v42 }
  0x2c   :  { %2269 = vmatpush3.bf16.msra.mxu1 %v2439_v25  ;;  %358 = vmatprep.subr.bf16.mxu0 %v2867_v43 }
  0x2d   :  { %2270 = vmatprep.subr.bf16.mxu1 %v2653_v1 }
  0x2f   :  { %359 = vmatpush1.bf16.msra.mxu0 %v2873_v44 }
  0x30   :  { %2271 = vmatpush3.bf16.msra.mxu1 %v2440_v26  ;;  %360 = vmatprep.subr.bf16.mxu0 %v2882_v49 }
  0x31   :  { %2276 = vmatprep.subr.bf16.mxu1 %v2653_v1 }
  0x33   :  { %361 = vmatpush1.bf16.msra.mxu0 %v2887_v50 }
  0x34   :  { %2288 = vmatprep.subr.bf16.mxu0 %v2653_v1 }
  0x8c   :  { %v245_v54 = vpop.permute.xlu1 %244 }
  0xe4   :  { %v113_v8 = vpop.f32.mrb[0].mxu0 }
  0xe5   :  { %v119_v9 = vadd.f32 %v113_v8, %v42_v7  ;;  %v2254_v10 = vpop.f32.mrb[1].mxu0  ;;  %v249_v8 = vld [vmem:[%s3344_s1] sm:$0x3] }
  0xe6   :  { %v116_v11 = vpop.f32.mrb[2].mxu0 }
  0xe7   :  { %v2255_v12 = vpop.f32.mrb[3].mxu0  ;;  %v121_v13 = vsel %vm120_vm2, %v119_v9, -inf }
  0xe8   :  { %122 = vmax.xlane.f32.xlu0 %v121_v13 }
 0x175   :  { %v123_v18 = vpop.xlane.xlu0 %122 }
 0x176   :  { %v124_v19 = vsub.f32 %v119_v9, %v123_v18 }
 0x178   :  { %v125_v20 = vmul.f32 1.442695, %v124_v19  ;;  %v2465_v19 = vld [vmem:[%s3350_s7] sm:$0xff]  }
 0x17a   :  { %2541 = vpow2.f32 %v125_v20  ;;  %v2466_v20 = vld [vmem:[%s3348_s5] sm:$0xff]  }
 0x184   :  { %v2542_v21 = vpop.eup %2541 }
 0x185   :  { %v127_v22 = vsel %vm120_vm2, %v2542_v21, 0.0 }
 0x186   :  { %128 = vadd.xlane.f32.xlu0 %v127_v22  ;;  %v2468_v22 = vld [vmem:[%s3348_s5 + $0x8] sm:$0xff]  }
 0x19c   :  { %419 = vrot.lane.b32.xlu0 %v40_v52, %s2655_s21 }
 0x213   :  { %v129_v45 = vpop.xlane.xlu0 %128 }
 0x214   :  { %2543 = vrcp.f32 %v129_v45 }
 0x217   :  { %v420_v25 = vpop.permute.xlu0 %419 }
 0x21e   :  { %v2544_v46 = vpop.eup %2543 }
 0x21f   :  { %v131_v47 = vmul.f32 %v2544_v46, %v2542_v21  ;;  %v2467_v21 = vld [vmem:[%s3350_s7 + $0x8] sm:$0xff]  }
 0x221   :  { %132 = vst [vmem:[#allocation4] sm:$0x1] %v131_v47  ;;  %v133_v48 = vpack.c.bf16 %v131_v47, %v131_v47 }
 0x223   :  { %2273 = vmatmul.mubr.bf16.vlgmr.msra.gmra.mrb[0].mxu1 %v133_v48 }
 0x224   :  { %2284 = vmatprep.mubr.msk.bf16.mxu1 %vm2654_vm0, %v2653_v1  ;;  %2277 = vmatpush3.bf16.msra.mxu1 %v2465_v19 }
 0x225   :  { %2278 = vmatprep.subr.bf16.mxu1 %v2653_v1 }
 0x228   :  { %2279 = vmatpush3.bf16.msra.mxu1 %v2467_v21 }
 0x229   :  { %2280 = vmatprep.subr.bf16.mxu1 %v2653_v1 }
 0x22c   :  { %2281 = vmatpush3.bf16.msra.mxu1 %v2469_v23 }
 0x22d   :  { %2282 = vmatprep.subr.bf16.mxu1 %v2653_v1 }
 0x230   :  { %2283 = vmatpush3.bf16.msra.mxu1 %v2471_v31 }
 0x231   :  { %2300 = vmatprep.subr.bf16.mxu1 %v2653_v1 }
 0x2f6   :  { %v232_v53 = vpop.f32.mrb[0].mxu1 }
 0x2f7   :  { %v238_v55 = vmax.f32 %v232_v53, 0.0  ;;  %v2274_v56 = vpop.f32.mrb[1].mxu1 }
 0x2f8   :  { %v235_v57 = vpop.f32.mrb[2].mxu1 }
 0x2f9   :  { %v247_v58 = vsel %vm75_vm1, %v238_v55, %v245_v54  ;;  %v2275_v59 = vpop.f32.mrb[3].mxu1  ;;  %v2057_v54 = vld [vmem:[%s3343_s0 + $0x1] sm:$0x1] }
 0x2fa   :  { %v248_v60 = vpack.c.bf16 %v247_v58, %v247_v58 }
 0x2fc   :  { %379 = vmatmul.mubr.bf16.vlgmr.msra.gmra.mrb[4].mxu0 %v248_v60 }
 0x2fd   :  { %2296 = vmatprep.mubr.msk.bf16.mxu0 %vm2654_vm0, %v2653_v1  ;;  %2289 = vmatpush3.bf16.msra.mxu0 %v2466_v20 }
 0x2fe   :  { %2290 = vmatprep.subr.bf16.mxu0 %v2653_v1 }
 0x301   :  { %2291 = vmatpush3.bf16.msra.mxu0 %v2468_v22 }
 0x302   :  { %2292 = vmatprep.subr.bf16.mxu0 %v2653_v1 }
 0x305   :  { %2293 = vmatpush3.bf16.msra.mxu0 %v2470_v24 }
 0x306   :  { %2294 = vmatprep.subr.bf16.mxu0 %v2653_v1 }
 0x309   :  { %2295 = vmatpush3.bf16.msra.mxu0 %v2472_v35 }
 0x30a   :  { %830 = vmatprep.subr.bf16.mxu0 %v2797_v29 }
 0x3cf   :  { %v380_v2 = vpop.f32.mrb[4].mxu0 }
 0x3d0   :  { %v382_v3 = vpop.f32.mrb[5].mxu0 }
 0x3d1   :  { %v389_v4 = vcombine.low %v380_v2, %v382_v3  ;;  %v384_v5 = vpop.f32.mrb[6].mxu0 }
 0x3d2   :  { %v385_v6 = vpop.f32.mrb[7].mxu0  ;;  %v2474_v5 = vld [vmem:[%s3345_s2 + $0x8] sm:$0xff]  }
 0x3d3   :  { %v396_v7 = vrot.slane %v389_v4, %v2900_v0  ;;  %v2473_v4 = vld [vmem:[%s3345_s2] sm:$0xff]   ;;  %v2475_v6 = vld [vmem:[%s3345_s2 + $0x10] sm:$0xff]  }
 0x3d5   :  { %v403_v9 = vrot.slane %v396_v7, %v2900_v0  ;;  %v2476_v7 = vld [vmem:[%s3345_s2 + $0x18] sm:$0xff]  }
 0x3d7   :  { %v405_v10 = vadd.f32 %v403_v9, %v249_v8 }
 0x3d9   :  { %413 = vrot.lane.b32.xlu1 %v405_v10, %s2655_s21  ;;  %v2051_v11 = vmul.f32 -1.442695, %v405_v10 }
 0x3db   :  { %2545 = vpow2.f32 %v2051_v11 }
 0x3e5   :  { %v2546_v12 = vpop.eup %2545 }
 0x3e6   :  { %v409_v13 = vadd.f32 1.0, %v2546_v12 }
 0x3e8   :  { %2547 = vrcp.f32 %v409_v13  ;;  %v2477_v13 = vld [vmem:[%s3345_s2 + $0x20] sm:$0xff]  }
 0x3f2   :  { %v2548_v16 = vpop.eup %2547 }
 0x3f3   :  { %v422_v26 = vmul.f32 %v2548_v16, %v420_v25  ;;  %v431_v47 = vrot.slane %v2548_v16, 1 }
 0x44b   :  { %v414_v14 = vpop.permute.xlu1 %413 }
 0x44c   :  { %v415_v15 = vrot.slane %v414_v14, 1  ;;  %v2478_v14 = vld [vmem:[%s3345_s2 + $0x28] sm:$0xff]  }
 0x44e   :  { %2549 = vtanh.f32 %v415_v15  ;;  %v2479_v15 = vld [vmem:[%s3345_s2 + $0x30] sm:$0xff]  }
 0x458   :  { %v2550_v17 = vpop.eup %2549 }
 0x459   :  { %v423_v18 = vmul.f32 %v2550_v17, %v2548_v16  ;;  %v2480_v16 = vld [vmem:[%s3345_s2 + $0x38] sm:$0xff]  }
 0x45b   :  { %425 = vrot.lane.b32.xlu1 %v423_v18, %s2655_s21 }
 0x4cd   :  { %v426_v27 = vpop.permute.xlu1 %425 }
 0x4ce   :  { %v2939_v45 = vadd.f32 %v426_v27, %v422_v26 }
 0x4d0   :  { %2551 = vtanh.f32 %v2939_v45 }
 0x4da   :  { %v2552_v46 = vpop.eup %2551 }
 0x4db   :  { %434 = vrot.lane.b32.xlu1 %v2552_v46, %s2655_s21 }
 0x54d   :  { %v435_v48 = vpop.permute.xlu1 %434 }
 0x54e   :  { %v437_v52 = vmul.f32 %v435_v48, %v431_v47 }
 0x550   :  { %v438_v53 = vpack.c.bf16 %v437_v52, %v437_v52  ;;  %v726_v3 = vrot.slane %v437_v52, %v2805_v32 }
 0x552   :  { %2285 = vmatmul.mubr.msk.bf16.vlgmr.msra.gmra.mrb[4].mxu1 %vm75_vm1, %v438_v53  ;;  %2297 = vmatmul.mubr.msk.bf16.vlgmr.msra.gmra.mrb[8].mxu0 %vm75_vm1, %v438_v53 }
 0x553   :  { %2316 = vmatprep.mubr.msk.bf16.mxu1 %vm2654_vm0, %v2653_v1  ;;  %831 = vmatpush1.bf16.msra.mxu0 %v2792_v28 }
 0x554   :  { %832 = vmatprep.subr.bf16.mxu0 %v2802_v30  ;;  %862 = vmatprep.mubr.bf16.mxu0 %v2656_v51 }
 0x555   :  { %2301 = vmatpush3.bf16.msra.mxu1 %v2473_v4  ;;  %v2481_v4 = vld [vmem:[%s3350_s7] sm:$0xff]  }
 0x556   :  { %2302 = vmatprep.subr.bf16.mxu1 %v2653_v1 }
 0x557   :  { %833 = vmatpush1.bf16.msra.mxu0 %v2811_v33 }
 0x558   :  { %834 = vmatprep.subr.bf16.mxu0 %v2817_v34 }
 0x559   :  { %2303 = vmatpush3.bf16.msra.mxu1 %v2474_v5  ;;  %v2482_v5 = vld [vmem:[%s3348_s5] sm:$0xff]  }
 0x55a   :  { %2304 = vmatprep.subr.bf16.mxu1 %v2653_v1 }
 0x55b   :  { %835 = vmatpush1.bf16.msra.mxu0 %v2825_v36 }
 0x55c   :  { %836 = vmatprep.subr.bf16.mxu0 %v2831_v37 }
 0x55d   :  { %2305 = vmatpush3.bf16.msra.mxu1 %v2475_v6  ;;  %v2483_v6 = vld [vmem:[%s3350_s7 + $0x8] sm:$0xff]  }
 0x55e   :  { %2306 = vmatprep.subr.bf16.mxu1 %v2653_v1 }
 0x55f   :  { %837 = vmatpush1.bf16.msra.mxu0 %v2837_v38 }
 0x560   :  { %838 = vmatprep.subr.bf16.mxu0 %v2843_v39 }
 0x561   :  { %2307 = vmatpush3.bf16.msra.mxu1 %v2476_v7  ;;  %v2484_v7 = vld [vmem:[%s3348_s5 + $0x8] sm:$0xff]  }
 0x562   :  { %2308 = vmatprep.subr.bf16.mxu1 %v2653_v1 }
 0x563   :  { %839 = vmatpush1.bf16.msra.mxu0 %v2849_v40 }
 0x564   :  { %840 = vmatprep.subr.bf16.mxu0 %v2855_v41 }
 0x565   :  { %2309 = vmatpush3.bf16.msra.mxu1 %v2477_v13  ;;  %v2488_v13 = vld [vmem:[%s3348_s5 + $0x18] sm:$0xff]  }
 0x566   :  { %2310 = vmatprep.subr.bf16.mxu1 %v2653_v1 }
 0x567   :  { %841 = vmatpush1.bf16.msra.mxu0 %v2861_v42 }
 0x568   :  { %842 = vmatprep.subr.bf16.mxu0 %v2867_v43 }
 0x569   :  { %2311 = vmatpush3.bf16.msra.mxu1 %v2478_v14 }
 0x56a   :  { %2312 = vmatprep.subr.bf16.mxu1 %v2653_v1 }
 0x56b   :  { %843 = vmatpush1.bf16.msra.mxu0 %v2873_v44 }
 0x56c   :  { %844 = vmatprep.subr.bf16.mxu0 %v2882_v49 }
 0x56d   :  { %2313 = vmatpush3.bf16.msra.mxu1 %v2479_v15 }
 0x56e   :  { %2314 = vmatprep.subr.bf16.mxu1 %v2653_v1 }
 0x56f   :  { %845 = vmatpush1.bf16.msra.mxu0 %v2887_v50 }
 0x570   :  { %2332 = vmatprep.subr.bf16.mxu0 %v2653_v1 }
 0x571   :  { %2315 = vmatpush3.bf16.msra.mxu1 %v2480_v16 }
 0x572   :  { %2320 = vmatprep.subr.bf16.mxu1 %v2653_v1 }
 0x625   :  { %v2969_v55 = vpop.f32.mrb[4].mxu1  ;;  %v596_v56 = vpop.f32.mrb[8].mxu0 }
 0x626   :  { %v602_v57 = vadd.f32 %v2057_v54, %v596_v56  ;;  %v2286_v58 = vpop.f32.mrb[5].mxu1  ;;  %v2298_v59 = vpop.f32.mrb[9].mxu0  ;;  %v2071_v54 = vld [vmem:[%s3344_s1 + $0x2] sm:$0x3] }
 0x627   :  { %v512_v60 = vpop.f32.mrb[6].mxu1  ;;  %v599_v61 = vpop.f32.mrb[10].mxu0 }
 0x628   :  { %v2287_v62 = vpop.f32.mrb[7].mxu1  ;;  %v2299_v63 = vpop.f32.mrb[11].mxu0  ;;  %v603_v2 = vsel %vm120_vm2, %v602_v57, -inf }
 0x629   :  { %604 = vmax.xlane.f32.xlu1 %v603_v2 }
 0x63a   :  { %727 = vrot.lane.b32.xlu1 %v726_v3, %s2655_s21 }
 0x6b6   :  { %v605_v8 = vpop.xlane.xlu1 %604 }
 0x6b7   :  { %v606_v9 = vsub.f32 %v602_v57, %v605_v8  ;;  %v2485_v8 = vld [vmem:[%s3350_s7 + $0x10] sm:$0xff]  }
 0x6b9   :  { %v607_v10 = vmul.f32 1.442695, %v606_v9  ;;  %v2486_v9 = vld [vmem:[%s3348_s5 + $0x10] sm:$0xff]  }
 0x6ba   :  { %v728_v24 = vpop.permute.xlu1 %727 }
 0x6bb   :  { %2553 = vpow2.f32 %v607_v10 }
 0x6c5   :  { %v2554_v11 = vpop.eup %2553 }
 0x6c6   :  { %v609_v12 = vsel %vm120_vm2, %v2554_v11, 0.0 }
 0x6c7   :  { %610 = vadd.xlane.f32.xlu0 %v609_v12  ;;  %v2487_v12 = vld [vmem:[%s3350_s7 + $0x18] sm:$0xff]  }
 0x754   :  { %v611_v17 = vpop.xlane.xlu0 %610 }
 0x755   :  { %2555 = vrcp.f32 %v611_v17 }
 0x75f   :  { %v2556_v18 = vpop.eup %2555 }
 0x760   :  { %v613_v19 = vmul.f32 %v2556_v18, %v2554_v11 }
 0x762   :  { %615 = vst [vmem:[#allocation4 + $0x1] sm:$0x1] %v613_v19  ;;  %v616_v20 = vpack.c.bf16 %v613_v19, %v613_v19 }
 0x764   :  { %2317 = vmatmul.mubr.bf16.vlgmr.msra.gmra.mrb[8].mxu1 %v616_v20 }
 0x765   :  { %2328 = vmatprep.mubr.msk.bf16.mxu1 %vm2654_vm0, %v2653_v1  ;;  %2321 = vmatpush3.bf16.msra.mxu1 %v2481_v4  ;;  %v2108_v4 = vld [vmem:[%s3344_s1 + $0x4] sm:$0x3] }
 0x766   :  { %2322 = vmatprep.subr.bf16.mxu1 %v2653_v1 }
 0x769   :  { %2323 = vmatpush3.bf16.msra.mxu1 %v2483_v6 }
 0x76a   :  { %2324 = vmatprep.subr.bf16.mxu1 %v2653_v1 }
 0x76d   :  { %2325 = vmatpush3.bf16.msra.mxu1 %v2485_v8 }
 0x76e   :  { %2326 = vmatprep.subr.bf16.mxu1 %v2653_v1 }
 0x771   :  { %2327 = vmatpush3.bf16.msra.mxu1 %v2487_v12 }
 0x772   :  { %2344 = vmatprep.subr.bf16.mxu1 %v2653_v1 }
 0x837   :  { %v715_v21 = vpop.f32.mrb[8].mxu1 }
 0x838   :  { %v721_v22 = vmax.f32 %v715_v21, 0.0  ;;  %v2318_v23 = vpop.f32.mrb[9].mxu1 }
 0x839   :  { %v718_v25 = vpop.f32.mrb[10].mxu1 }
 0x83a   :  { %v730_v26 = vsel %vm75_vm1, %v721_v22, %v728_v24  ;;  %v2319_v27 = vpop.f32.mrb[11].mxu1  ;;  %v2493_v24 = vld [vmem:[%s3345_s2 + $0x20] sm:$0xff]   ;;  %v2494_v25 = vld [vmem:[%s3345_s2 + $0x28] sm:$0xff]  }
 0x83b   :  { %v731_v31 = vpack.c.bf16 %v730_v26, %v730_v26  ;;  %v2495_v26 = vld [vmem:[%s3345_s2 + $0x30] sm:$0xff]   ;;  %v2496_v27 = vld [vmem:[%s3345_s2 + $0x38] sm:$0xff]  }
 0x83d   :  { %863 = vmatmul.mubr.bf16.vlgmr.msra.gmra.mrb[12].mxu0 %v731_v31 }
 0x83e   :  { %2340 = vmatprep.mubr.msk.bf16.mxu0 %vm2654_vm0, %v2653_v1  ;;  %2333 = vmatpush3.bf16.msra.mxu0 %v2482_v5 }
 0x83f   :  { %2334 = vmatprep.subr.bf16.mxu0 %v2653_v1 }
 0x842   :  { %2335 = vmatpush3.bf16.msra.mxu0 %v2484_v7 }
 0x843   :  { %2336 = vmatprep.subr.bf16.mxu0 %v2653_v1 }
 0x846   :  { %2337 = vmatpush3.bf16.msra.mxu0 %v2486_v9 }
 0x847   :  { %2338 = vmatprep.subr.bf16.mxu0 %v2653_v1 }
 0x84a   :  { %2339 = vmatpush3.bf16.msra.mxu0 %v2488_v13 }
 0x84b   :  { %1311 = vmatprep.subr.bf16.mxu0 %v2797_v29 }
 0x910   :  { %v864_v35 = vpop.f32.mrb[12].mxu0 }
 0x911   :  { %v866_v46 = vpop.f32.mrb[13].mxu0 }
 0x912   :  { %v873_v47 = vcombine.low %v864_v35, %v866_v46  ;;  %v868_v48 = vpop.f32.mrb[14].mxu0 }
 0x913   :  { %v869_v52 = vpop.f32.mrb[15].mxu0 }
 0x914   :  { %v880_v53 = vrot.slane %v873_v47, %v2900_v0 }
 0x916   :  { %v887_v56 = vrot.slane %v880_v53, %v2900_v0 }
 0x918   :  { %v889_v57 = vadd.f32 %v2071_v54, %v887_v56 }
 0x91a   :  { %897 = vrot.lane.b32.xlu0 %v889_v57, %s2655_s21  ;;  %v2088_v58 = vmul.f32 -1.442695, %v889_v57 }
 0x91c   :  { %2557 = vpow2.f32 %v2088_v58 }
 0x926   :  { %v2558_v59 = vpop.eup %2557 }
 0x927   :  { %v893_v60 = vadd.f32 1.0, %v2558_v59 }
 0x929   :  { %2559 = vrcp.f32 %v893_v60 }
 0x933   :  { %v2560_v63 = vpop.eup %2559 }
 0x934   :  { %v902_v10 = vmul.f32 %v2560_v63, %v2939_v45  ;;  %v911_v15 = vrot.slane %v2560_v63, 1 }
 0x98c   :  { %v898_v61 = vpop.permute.xlu0 %897 }
 0x98d   :  { %v899_v62 = vrot.slane %v898_v61, 1 }
 0x98f   :  { %2561 = vtanh.f32 %v899_v62 }
 0x999   :  { %v2562_v2 = vpop.eup %2561 }
 0x99a   :  { %v903_v3 = vmul.f32 %v2562_v2, %v2560_v63 }
 0x99c   :  { %905 = vrot.lane.b32.xlu1 %v903_v3, %s2655_s21 }
 0xa0e   :  { %v906_v11 = vpop.permute.xlu1 %905 }
 0xa0f   :  { %v3050_v14 = vadd.f32 %v906_v11, %v902_v10 }
 0xa11   :  { %2563 = vtanh.f32 %v3050_v14 }
 0xa1b   :  { %v2564_v45 = vpop.eup %2563 }
 0xa1c   :  { %914 = vrot.lane.b32.xlu1 %v2564_v45, %s2655_s21 }
 0xa8e   :  { %v915_v16 = vpop.permute.xlu1 %914 }
 0xa8f   :  { %v917_v17 = vmul.f32 %v915_v16, %v911_v15  ;;  %v2497_v15 = vld [vmem:[%s3350_s7] sm:$0xff]  }
 0xa90   :  { %v2498_v16 = vld [vmem:[%s3348_s5] sm:$0xff]  }
 0xa91   :  { %v918_v18 = vpack.c.bf16 %v917_v17, %v917_v17 }
 0xa93   :  { %2329 = vmatmul.mubr.msk.bf16.vlgmr.msra.gmra.mrb[12].mxu1 %vm75_vm1, %v918_v18  ;;  %2341 = vmatmul.mubr.msk.bf16.vlgmr.msra.gmra.mrb[16].mxu0 %vm75_vm1, %v918_v18  ;;  %v2500_v18 = vld [vmem:[%s3348_s5 + $0x8] sm:$0xff]  }
 0xa94   :  { %2360 = vmatprep.mubr.msk.bf16.mxu1 %vm2654_vm0, %v2653_v1  ;;  %1312 = vmatpush1.bf16.msra.mxu0 %v2792_v28  ;;  %v2094_v28 = vld [vmem:[%s3343_s0 + $0x2] sm:$0x1] }
 0xa95   :  { %1313 = vmatprep.subr.bf16.mxu0 %v2802_v30  ;;  %1343 = vmatprep.mubr.bf16.mxu0 %v2656_v51 }
 0xa98   :  { %1314 = vmatpush1.bf16.msra.mxu0 %v2811_v33 }
 0xa99   :  { %1315 = vmatprep.subr.bf16.mxu0 %v2817_v34 }
 0xa9c   :  { %1316 = vmatpush1.bf16.msra.mxu0 %v2825_v36 }
 0xa9d   :  { %1317 = vmatprep.subr.bf16.mxu0 %v2831_v37 }
 0xaa0   :  { %1318 = vmatpush1.bf16.msra.mxu0 %v2837_v38 }
 0xaa1   :  { %1319 = vmatprep.subr.bf16.mxu0 %v2843_v39 }
 0xaa4   :  { %1320 = vmatpush1.bf16.msra.mxu0 %v2849_v40 }
 0xaa5   :  { %1321 = vmatprep.subr.bf16.mxu0 %v2855_v41 }
 0xaa8   :  { %1322 = vmatpush1.bf16.msra.mxu0 %v2861_v42  ;;  %v1207_v42 = vrot.slane %v917_v17, %v2805_v32  ;;  %v2499_v17 = vld [vmem:[%s3350_s7 + $0x8] sm:$0xff]  }
 0xaa9   :  { %1323 = vmatprep.subr.bf16.mxu0 %v2867_v43  ;;  %v2489_v43 = vld [vmem:[%s3345_s2] sm:$0xff]  }
 0xaaa   :  { %2345 = vmatpush3.bf16.msra.mxu1 %v2489_v43  ;;  %v2131_v43 = vld [vmem:[%s3343_s0 + $0x3] sm:$0x1] }
 0xaab   :  { %2346 = vmatprep.subr.bf16.mxu1 %v2653_v1 }
 0xaac   :  { %1324 = vmatpush1.bf16.msra.mxu0 %v2873_v44  ;;  %v2490_v44 = vld [vmem:[%s3345_s2 + $0x8] sm:$0xff]  }
 0xaad   :  { %1325 = vmatprep.subr.bf16.mxu0 %v2882_v49  ;;  %v2491_v49 = vld [vmem:[%s3345_s2 + $0x10] sm:$0xff]  }
 0xaae   :  { %2347 = vmatpush3.bf16.msra.mxu1 %v2490_v44 }
 0xaaf   :  { %2348 = vmatprep.subr.bf16.mxu1 %v2653_v1 }
 0xab0   :  { %1326 = vmatpush1.bf16.msra.mxu0 %v2887_v50  ;;  %v2492_v50 = vld [vmem:[%s3345_s2 + $0x18] sm:$0xff]  }
 0xab1   :  { %2376 = vmatprep.subr.bf16.mxu0 %v2653_v1 }
 0xab2   :  { %2349 = vmatpush3.bf16.msra.mxu1 %v2491_v49 }
 0xab3   :  { %2350 = vmatprep.subr.bf16.mxu1 %v2653_v1 }
 0xab6   :  { %2351 = vmatpush3.bf16.msra.mxu1 %v2492_v50 }
 0xab7   :  { %2352 = vmatprep.subr.bf16.mxu1 %v2653_v1 }
 0xaba   :  { %2353 = vmatpush3.bf16.msra.mxu1 %v2493_v24 }
 0xabb   :  { %2354 = vmatprep.subr.bf16.mxu1 %v2653_v1 }
 0xabe   :  { %2355 = vmatpush3.bf16.msra.mxu1 %v2494_v25 }
 0xabf   :  { %2356 = vmatprep.subr.bf16.mxu1 %v2653_v1 }
 0xac2   :  { %2357 = vmatpush3.bf16.msra.mxu1 %v2495_v26 }
 0xac3   :  { %2358 = vmatprep.subr.bf16.mxu1 %v2653_v1 }
 0xac6   :  { %2359 = vmatpush3.bf16.msra.mxu1 %v2496_v27  ;;  %v2506_v27 = vld [vmem:[%s3345_s2 + $0x8] sm:$0xff]  }
 0xac7   :  { %2364 = vmatprep.subr.bf16.mxu1 %v2653_v1 }
 0xb66   :  { %v3080_v29 = vpop.f32.mrb[12].mxu1  ;;  %v1077_v30 = vpop.f32.mrb[16].mxu0 }
 0xb67   :  { %v1083_v33 = vadd.f32 %v2094_v28, %v1077_v30  ;;  %v2330_v34 = vpop.f32.mrb[13].mxu1  ;;  %v2342_v36 = vpop.f32.mrb[17].mxu0  ;;  %v2501_v28 = vld [vmem:[%s3350_s7 + $0x10] sm:$0xff]  }
 0xb68   :  { %v992_v37 = vpop.f32.mrb[14].mxu1  ;;  %v1080_v38 = vpop.f32.mrb[18].mxu0  ;;  %v2502_v30 = vld [vmem:[%s3348_s5 + $0x10] sm:$0xff]   ;;  %v2503_v36 = vld [vmem:[%s3350_s7 + $0x18] sm:$0xff]  }
 0xb69   :  { %v2331_v39 = vpop.f32.mrb[15].mxu1  ;;  %v2343_v40 = vpop.f32.mrb[19].mxu0  ;;  %v1084_v41 = vsel %vm120_vm2, %v1083_v33, -inf  ;;  %v2504_v37 = vld [vmem:[%s3348_s5 + $0x18] sm:$0xff]  }
 0xb6a   :  { %1085 = vmax.xlane.f32.xlu1 %v1084_v41 }
 0xb7b   :  { %1208 = vrot.lane.b32.xlu1 %v1207_v42, %s2655_s21 }
 0xbf7   :  { %v1086_v19 = vpop.xlane.xlu1 %1085 }
 0xbf8   :  { %v1087_v20 = vsub.f32 %v1083_v33, %v1086_v19 }
 0xbfa   :  { %v1088_v21 = vmul.f32 1.442695, %v1087_v20 }
 0xbfb   :  { %v1209_v54 = vpop.permute.xlu1 %1208 }
 0xbfc   :  { %2565 = vpow2.f32 %v1088_v21 }
 0xc06   :  { %v2566_v22 = vpop.eup %2565 }
 0xc07   :  { %v1090_v23 = vsel %vm120_vm2, %v2566_v22, 0.0 }
 0xc08   :  { %1091 = vadd.xlane.f32.xlu0 %v1090_v23 }
 0xc95   :  { %v1092_v31 = vpop.xlane.xlu0 %1091 }
 0xc96   :  { %2567 = vrcp.f32 %v1092_v31  ;;  %v2507_v31 = vld [vmem:[%s3345_s2 + $0x10] sm:$0xff]  }
 0xca0   :  { %v2568_v35 = vpop.eup %2567 }
 0xca1   :  { %v1094_v46 = vmul.f32 %v2568_v35, %v2566_v22  ;;  %v2508_v35 = vld [vmem:[%s3345_s2 + $0x18] sm:$0xff]  }
 0xca3   :  { %1096 = vst [vmem:[#allocation4 + $0x2] sm:$0x1] %v1094_v46  ;;  %v1097_v47 = vpack.c.bf16 %v1094_v46, %v1094_v46 }
 0xca5   :  { %2361 = vmatmul.mubr.bf16.vlgmr.msra.gmra.mrb[16].mxu1 %v1097_v47 }
 0xca6   :  { %2372 = vmatprep.mubr.msk.bf16.mxu1 %vm2654_vm0, %v2653_v1  ;;  %2365 = vmatpush3.bf16.msra.mxu1 %v2497_v15  ;;  %v2536_v15 = vld [vmem:[%s3349_s6 + $0x74] ss:$8 sps:$4 sm:$0xff]  }
 0xca7   :  { %2366 = vmatprep.subr.bf16.mxu1 %v2653_v1 }
 0xcaa   :  { %2367 = vmatpush3.bf16.msra.mxu1 %v2499_v17 }
 0xcab   :  { %2368 = vmatprep.subr.bf16.mxu1 %v2653_v1 }
 0xcae   :  { %2369 = vmatpush3.bf16.msra.mxu1 %v2501_v28 }
 0xcaf   :  { %2370 = vmatprep.subr.bf16.mxu1 %v2653_v1 }
 0xcb2   :  { %2371 = vmatpush3.bf16.msra.mxu1 %v2503_v36 }
 0xcb3   :  { %2388 = vmatprep.subr.bf16.mxu1 %v2653_v1 }
 0xd78   :  { %v1196_v48 = vpop.f32.mrb[16].mxu1 }
 0xd79   :  { %v1202_v52 = vmax.f32 %v1196_v48, 0.0  ;;  %v2362_v53 = vpop.f32.mrb[17].mxu1 }
 0xd7a   :  { %v1199_v56 = vpop.f32.mrb[18].mxu1 }
 0xd7b   :  { %v1211_v57 = vsel %vm75_vm1, %v1202_v52, %v1209_v54  ;;  %v2363_v58 = vpop.f32.mrb[19].mxu1  ;;  %v2509_v54 = vld [vmem:[%s3345_s2 + $0x20] sm:$0xff]   ;;  %v2510_v56 = vld [vmem:[%s3345_s2 + $0x28] sm:$0xff]  }
 0xd7c   :  { %v1212_v59 = vpack.c.bf16 %v1211_v57, %v1211_v57  ;;  %v2511_v57 = vld [vmem:[%s3345_s2 + $0x30] sm:$0xff]   ;;  %v2512_v58 = vld [vmem:[%s3345_s2 + $0x38] sm:$0xff]  }
 0xd7e   :  { %1344 = vmatmul.mubr.bf16.vlgmr.msra.gmra.mrb[20].mxu0 %v1212_v59  ;;  %v2513_v59 = vld [vmem:[%s3349_s6] ss:$8 sps:$4 sm:$0xff]  }
 0xd7f   :  { %2384 = vmatprep.mubr.msk.bf16.mxu0 %vm2654_vm0, %v2653_v1  ;;  %2377 = vmatpush3.bf16.msra.mxu0 %v2498_v16  ;;  %v2534_v16 = vld [vmem:[%s3349_s6 + $0x70] ss:$8 sps:$4 sm:$0xff]  }
 0xd80   :  { %2378 = vmatprep.subr.bf16.mxu0 %v2653_v1 }
 0xd83   :  { %2379 = vmatpush3.bf16.msra.mxu0 %v2500_v18 }
 0xd84   :  { %2380 = vmatprep.subr.bf16.mxu0 %v2653_v1 }
 0xd87   :  { %2381 = vmatpush3.bf16.msra.mxu0 %v2502_v30 }
 0xd88   :  { %2382 = vmatprep.subr.bf16.mxu0 %v2653_v1 }
 0xd8b   :  { %2383 = vmatpush3.bf16.msra.mxu0 %v2504_v37 }
 0xe51   :  { %v1345_v60 = vpop.f32.mrb[20].mxu0 }
 0xe52   :  { %v1347_v61 = vpop.f32.mrb[21].mxu0 }
 0xe53   :  { %v1354_v62 = vcombine.low %v1345_v60, %v1347_v61  ;;  %v1349_v63 = vpop.f32.mrb[22].mxu0  ;;  %v2515_v60 = vld [vmem:[%s3349_s6 + $0x4] ss:$8 sps:$4 sm:$0xff]   ;;  %v2518_v61 = vld [vmem:[%s3349_s6 + $0x14] ss:$8 sps:$4 sm:$0xff]  }
 0xe54   :  { %v1350_v2 = vpop.f32.mrb[23].mxu0  ;;  %1792 = vmatprep.subr.bf16.mxu0 %v2515_v60  ;;  %v2521_v63 = vld [vmem:[%s3349_s6 + $0x24] ss:$8 sps:$4 sm:$0xff]  }
 0xe55   :  { %v1361_v3 = vrot.slane %v1354_v62, %v2900_v0  ;;  %v2516_v62 = vld [vmem:[%s3349_s6 + $0x10] ss:$8 sps:$4 sm:$0xff]   ;;  %v2519_v2 = vld [vmem:[%s3349_s6 + $0x20] ss:$8 sps:$4 sm:$0xff]  }
 0xe57   :  { %v1368_v5 = vrot.slane %v1361_v3, %v2900_v0  ;;  %v2524_v3 = vld [vmem:[%s3349_s6 + $0x34] ss:$8 sps:$4 sm:$0xff]  }
 0xe59   :  { %v1370_v6 = vadd.f32 %v2108_v4, %v1368_v5  ;;  %v2522_v4 = vld [vmem:[%s3349_s6 + $0x30] ss:$8 sps:$4 sm:$0xff]   ;;  %v2527_v5 = vld [vmem:[%s3349_s6 + $0x44] ss:$8 sps:$4 sm:$0xff]  }
 0xe5b   :  { %1378 = vrot.lane.b32.xlu0 %v1370_v6, %s2655_s21  ;;  %v2125_v7 = vmul.f32 -1.442695, %v1370_v6  ;;  %v2525_v6 = vld [vmem:[%s3349_s6 + $0x40] ss:$8 sps:$4 sm:$0xff]  }
 0xe5d   :  { %2569 = vpow2.f32 %v2125_v7  ;;  %v2530_v7 = vld [vmem:[%s3349_s6 + $0x54] ss:$8 sps:$4 sm:$0xff]  }
 0xe67   :  { %v2570_v8 = vpop.eup %2569 }
 0xe68   :  { %v1374_v9 = vadd.f32 1.0, %v2570_v8  ;;  %v2528_v8 = vld [vmem:[%s3349_s6 + $0x50] ss:$8 sps:$4 sm:$0xff]  }
 0xe6a   :  { %2571 = vrcp.f32 %v1374_v9  ;;  %v2533_v9 = vld [vmem:[%s3349_s6 + $0x64] ss:$8 sps:$4 sm:$0xff]  }
 0xe74   :  { %v2572_v12 = vpop.eup %2571 }
 0xe75   :  { %v1383_v33 = vmul.f32 %v2572_v12, %v3050_v14  ;;  %v1392_v14 = vrot.slane %v2572_v12, 1 }
 0xecd   :  { %v1379_v10 = vpop.permute.xlu0 %1378 }
 0xece   :  { %v1380_v11 = vrot.slane %v1379_v10, 1  ;;  %v2531_v10 = vld [vmem:[%s3349_s6 + $0x60] ss:$8 sps:$4 sm:$0xff]  }
 0xed0   :  { %2573 = vtanh.f32 %v1380_v11 }
 0xeda   :  { %v2574_v13 = vpop.eup %2573 }
 0xedb   :  { %v1384_v45 = vmul.f32 %v2574_v13, %v2572_v12 }
 0xedd   :  { %1386 = vrot.lane.b32.xlu1 %v1384_v45, %s2655_s21 }
 0xf4f   :  { %v1387_v34 = vpop.permute.xlu1 %1386 }
 0xf50   :  { %v3161_v38 = vadd.f32 %v1387_v34, %v1383_v33 }
 0xf52   :  { %2575 = vtanh.f32 %v3161_v38 }
 0xf5c   :  { %v2576_v39 = vpop.eup %2575 }
 0xf5d   :  { %1395 = vrot.lane.b32.xlu1 %v2576_v39, %s2655_s21 }
 0xfcf   :  { %v1396_v40 = vpop.permute.xlu1 %1395 }
 0xfd0   :  { %v1398_v41 = vmul.f32 %v1396_v40, %v1392_v14 }
 0xfd2   :  { %v1399_v42 = vpack.c.bf16 %v1398_v41, %v1398_v41  ;;  %v1688_v26 = vrot.slane %v1398_v41, %v2805_v32 }
 0xfd4   :  { %2373 = vmatmul.mubr.msk.bf16.vlgmr.msra.gmra.mrb[20].mxu1 %vm75_vm1, %v1399_v42  ;;  %2385 = vmatmul.mubr.msk.bf16.vlgmr.msra.gmra.mrb[24].mxu0 %vm75_vm1, %v1399_v42 }
 0xfd5   :  { %2404 = vmatprep.mubr.msk.bf16.mxu1 %vm2654_vm0, %v2653_v1  ;;  %1824 = vmatprep.mubr.bf16.mxu0 %v2656_v51  ;;  %v2505_v51 = vld [vmem:[%s3345_s2] sm:$0xff]  }
 0xfd6   :  { %2389 = vmatpush3.bf16.msra.mxu1 %v2505_v51  ;;  %1793 = vmatpush1.bf16.msra.mxu0 %v2513_v59 }
 0xfd7   :  { %2390 = vmatprep.subr.bf16.mxu1 %v2653_v1  ;;  %1794 = vmatprep.subr.bf16.mxu0 %v2518_v61 }
 0xfda   :  { %2391 = vmatpush3.bf16.msra.mxu1 %v2506_v27  ;;  %1795 = vmatpush1.bf16.msra.mxu0 %v2516_v62 }
 0xfdb   :  { %2392 = vmatprep.subr.bf16.mxu1 %v2653_v1  ;;  %1796 = vmatprep.subr.bf16.mxu0 %v2521_v63 }
 0xfde   :  { %2393 = vmatpush3.bf16.msra.mxu1 %v2507_v31  ;;  %1797 = vmatpush1.bf16.msra.mxu0 %v2519_v2  ;;  %v1408_v31 = vld [vmem:[%s3351_s8] sm:$0x1] }
 0xfdf   :  { %2394 = vmatprep.subr.bf16.mxu1 %v2653_v1  ;;  %1798 = vmatprep.subr.bf16.mxu0 %v2524_v3 }
 0xfe2   :  { %2395 = vmatpush3.bf16.msra.mxu1 %v2508_v35  ;;  %1799 = vmatpush1.bf16.msra.mxu0 %v2522_v4 }
 0xfe3   :  { %2396 = vmatprep.subr.bf16.mxu1 %v2653_v1  ;;  %1800 = vmatprep.subr.bf16.mxu0 %v2527_v5 }
 0xfe6   :  { %2397 = vmatpush3.bf16.msra.mxu1 %v2509_v54  ;;  %1801 = vmatpush1.bf16.msra.mxu0 %v2525_v6  ;;  %v2540_v54 = vld [vmem:[%s3350_s7 + $0x18] sm:$0xff]  }
 0xfe7   :  { %2398 = vmatprep.subr.bf16.mxu1 %v2653_v1  ;;  %1802 = vmatprep.subr.bf16.mxu0 %v2530_v7 }
 0xfea   :  { %2399 = vmatpush3.bf16.msra.mxu1 %v2510_v56  ;;  %1803 = vmatpush1.bf16.msra.mxu0 %v2528_v8 }
 0xfeb   :  { %2400 = vmatprep.subr.bf16.mxu1 %v2653_v1  ;;  %1804 = vmatprep.subr.bf16.mxu0 %v2533_v9 }
 0xfee   :  { %2401 = vmatpush3.bf16.msra.mxu1 %v2511_v57  ;;  %1805 = vmatpush1.bf16.msra.mxu0 %v2531_v10 }
 0xfef   :  { %2402 = vmatprep.subr.bf16.mxu1 %v2653_v1  ;;  %1806 = vmatprep.subr.bf16.mxu0 %v2536_v15 }
 0xff2   :  { %2403 = vmatpush3.bf16.msra.mxu1 %v2512_v58  ;;  %1807 = vmatpush1.bf16.msra.mxu0 %v2534_v16  ;;  %v927_v58 = vld [vmem:[%s3351_s8] sm:$0x1] }
 0xff3   :  { %2408 = vmatprep.subr.bf16.mxu1 %v2653_v1  ;;  %v990_v59 = vadd.f32 %v3080_v29, %v927_v58 }
0x10a7   :  { %v3174_v44 = vpop.f32.mrb[20].mxu1  ;;  %v1558_v49 = vpop.f32.mrb[24].mxu0 }
0x10a8   :  { %v1564_v50 = vadd.f32 %v2131_v43, %v1558_v49  ;;  %v2374_v19 = vpop.f32.mrb[21].mxu1  ;;  %v2386_v20 = vpop.f32.mrb[25].mxu0  ;;  %v2145_v49 = vld [vmem:[%s3344_s1 + $0x6] sm:$0x3]  ;;  %v1471_v35 = vadd.f32 %v3174_v44, %v1408_v31  ;;  %v2539_v44 = vld [vmem:[%s3350_s7 + $0x10] sm:$0xff]  }
0x10a9   :  { %v1473_v21 = vpop.f32.mrb[22].mxu1  ;;  %v1561_v22 = vpop.f32.mrb[26].mxu0 }
0x10aa   :  { %v2375_v23 = vpop.f32.mrb[23].mxu1  ;;  %v2387_v24 = vpop.f32.mrb[27].mxu0  ;;  %v1565_v25 = vsel %vm120_vm2, %v1564_v50, -inf }
0x10ab   :  { %1566 = vmax.xlane.f32.xlu0 %v1565_v25 }
0x10c1   :  { %1689 = vrot.lane.b32.xlu0 %v1688_v26, %s2655_s21 }
0x1138   :  { %v1567_v46 = vpop.xlane.xlu0 %1566 }
0x1139   :  { %v1568_v47 = vsub.f32 %v1564_v50, %v1567_v46 }
0x113b   :  { %v1569_v48 = vmul.f32 1.442695, %v1568_v47  ;;  %v1476_v47 = vsel %vm120_vm2, %v1471_v35, -inf }
0x113c   :  { %v1690_v30 = vpop.permute.xlu0 %1689 }
0x113d   :  { %2577 = vpow2.f32 %v1569_v48  ;;  %v2537_v48 = vld [vmem:[%s3350_s7] sm:$0xff]  }
0x1147   :  { %v2578_v52 = vpop.eup %2577 }
0x1148   :  { %v1571_v53 = vsel %vm120_vm2, %v2578_v52, 0.0 }
0x1149   :  { %1572 = vadd.xlane.f32.xlu1 %v1571_v53 }
0x11d6   :  { %v1573_v11 = vpop.xlane.xlu1 %1572 }
0x11d7   :  { %2579 = vrcp.f32 %v1573_v11 }
0x11e1   :  { %v2580_v12 = vpop.eup %2579 }
0x11e2   :  { %v1575_v13 = vmul.f32 %v2580_v12, %v2578_v52 }
0x11e4   :  { %1577 = vst [vmem:[#allocation4 + $0x3] sm:$0x1] %v1575_v13  ;;  %v1578_v45 = vpack.c.bf16 %v1575_v13, %v1575_v13 }
0x11e6   :  { %2405 = vmatmul.mubr.bf16.vlgmr.msra.gmra.mrb[24].mxu1 %v1578_v45 }
0x11e7   :  { %2416 = vmatprep.mubr.msk.bf16.mxu1 %vm2654_vm0, %v2653_v1  ;;  %2409 = vmatpush3.bf16.msra.mxu1 %v2537_v48 }
0x11e8   :  { %2410 = vmatprep.subr.bf16.mxu1 %v2653_v1 }
0x12b9   :  { %v1677_v17 = vpop.f32.mrb[24].mxu1 }
0x12ba   :  { %v1683_v18 = vmax.f32 %v1677_v17, 0.0  ;;  %v2406_v28 = vpop.f32.mrb[25].mxu1 }
0x12bb   :  { %v1680_v33 = vpop.f32.mrb[26].mxu1 }
0x12bc   :  { %v1692_v34 = vsel %vm75_vm1, %v1683_v18, %v1690_v30  ;;  %v2407_v36 = vpop.f32.mrb[27].mxu1 }
0x12bd   :  { %v1693_v37 = vpack.c.bf16 %v1692_v34, %v1692_v34  ;;  %v1889_v34 = vld [vmem:[%s3351_s8] sm:$0x1] }
0x12bf   :  { %1825 = vmatmul.mubr.bf16.vlgmr.msra.gmra.mrb[28].mxu0 %v1693_v37 }
0x1392   :  { %v1826_v39 = vpop.f32.mrb[28].mxu0 }
0x1393   :  { %v1828_v14 = vpop.f32.mrb[29].mxu0 }
0x1394   :  { %v1835_v40 = vcombine.low %v1826_v39, %v1828_v14  ;;  %v1830_v41 = vpop.f32.mrb[30].mxu0 }
0x1395   :  { %v1831_v42 = vpop.f32.mrb[31].mxu0 }
0x1396   :  { %v1842_v43 = vrot.slane %v1835_v40, %v2900_v0 }
0x1398   :  { %v1849_v50 = vrot.slane %v1842_v43, %v2900_v0  ;;  %v447_v0 = vld [vmem:[%s3351_s8] sm:$0x1]  ;;  %s2658_s8 = smov [#allocation4]  }
0x1399   :  { %v510_v27 = vadd.f32 %v2969_v55, %v447_v0  ;;  %v2538_v55 = vld [vmem:[%s3350_s7 + $0x8] sm:$0xff]  }
0x139a   :  { %v1851_v19 = vadd.f32 %v2145_v49, %v1849_v50  ;;  %2411 = vmatpush3.bf16.msra.mxu1 %v2538_v55 }
0x139b   :  { %v515_v46 = vsel %vm120_vm2, %v510_v27, -inf  ;;  %2412 = vmatprep.subr.bf16.mxu1 %v2653_v1 }
0x139c   :  { %1859 = vrot.lane.b32.xlu1 %v1851_v19, %s2655_s21  ;;  %v2162_v20 = vmul.f32 -1.442695, %v1851_v19 }
0x139e   :  { %2581 = vpow2.f32 %v2162_v20  ;;  %2413 = vmatpush3.bf16.msra.mxu1 %v2539_v44 }
0x139f   :  { %2414 = vmatprep.subr.bf16.mxu1 %v2653_v1  ;;  %v995_v1 = vsel %vm120_vm2, %v990_v59, -inf }
0x13a2   :  { %2415 = vmatpush3.bf16.msra.mxu1 %v2540_v54 }
0x13a8   :  { %v2582_v21 = vpop.eup %2581 }
0x13a9   :  { %v1855_v22 = vadd.f32 1.0, %v2582_v21 }
0x13ab   :  { %2583 = vrcp.f32 %v1855_v22 }
0x13b5   :  { %v2584_v25 = vpop.eup %2583 }
0x13b6   :  { %v1864_v52 = vmul.f32 %v2584_v25, %v3161_v38  ;;  %v1873_v7 = vrot.slane %v2584_v25, 1 }
0x140e   :  { %v1860_v23 = vpop.permute.xlu1 %1859 }
0x140f   :  { %v1861_v24 = vrot.slane %v1860_v23, 1 }
0x1411   :  { %2585 = vtanh.f32 %v1861_v24 }
0x141b   :  { %v2586_v26 = vpop.eup %2585 }
0x141c   :  { %v1865_v51 = vmul.f32 %v2586_v26, %v2584_v25 }
0x141e   :  { %1867 = vrot.lane.b32.xlu0 %v1865_v51, %s2655_s21 }
0x143d   :  { %516 = vmax.xlane.f32.xlu0 %v515_v46 }
0x1441   :  { %1477 = vmax.xlane.f32.xlu0 %v1476_v47 }
0x1490   :  { %v1868_v53 = vpop.permute.xlu0 %1867 }
0x1491   :  { %v1870_v56 = vadd.f32 %v1868_v53, %v1864_v52 }
0x1493   :  { %2587 = vtanh.f32 %v1870_v56  ;;  %v1977_v29 = vrot.slane %v1870_v56, %v2805_v32 }
0x149d   :  { %v2588_v57 = vpop.eup %2587 }
0x149e   :  { %1876 = vrot.lane.b32.xlu1 %v2588_v57, %s2655_s21 }
0x14c2   :  { %996 = vmax.xlane.f32.xlu1 %v995_v1 }
0x14ca   :  { %v517_v38 = vpop.xlane.xlu0 %516 }
0x14cb   :  { %v518_v60 = vsub.f32 %v510_v27, %v517_v38 }
0x14cd   :  { %v519_v61 = vmul.f32 1.442695, %v518_v60 }
0x14ce   :  { %v1478_v62 = vpop.xlane.xlu0 %1477 }
0x14cf   :  { %2589 = vpow2.f32 %v519_v61  ;;  %v1479_v63 = vsub.f32 %v1471_v35, %v1478_v62 }
0x14d1   :  { %v1480_v2 = vmul.f32 1.442695, %v1479_v63 }
0x14d3   :  { %2591 = vpow2.f32 %v1480_v2 }
0x14d9   :  { %v2590_v3 = vpop.eup %2589 }
0x14da   :  { %v521_v4 = vsel %vm120_vm2, %v2590_v3, 0.0 }
0x14db   :  { %522 = vadd.xlane.f32.xlu1 %v521_v4 }
0x14dd   :  { %v2592_v5 = vpop.eup %2591 }
0x14de   :  { %v1482_v6 = vsel %vm120_vm2, %v2592_v5, 0.0 }
0x14df   :  { %1483 = vadd.xlane.f32.xlu1 %v1482_v6 }
0x14f0   :  { %1978 = vrot.lane.b32.xlu1 %v1977_v29, %s2655_s21 }
0x1510   :  { %v1877_v8 = vpop.permute.xlu1 %1876 }
0x1511   :  { %v1879_v9 = vmul.f32 %v1877_v8, %v1873_v7 }
0x1513   :  { %v1880_v10 = vpack.c.bf16 %v1879_v9, %v1879_v9  ;;  %1972 = vst.msk [vmem:[%s3354_s11] sm:$0x1] %vm1971_vm3, %v1879_v9 }
0x1515   :  { %2417 = vmatmul.mubr.msk.bf16.vlgmr.msra.gmra.mrb[28].mxu1 %vm75_vm1, %v1880_v10 }
0x154f   :  { %v997_v11 = vpop.xlane.xlu1 %996 }
0x1550   :  { %v998_v30 = vsub.f32 %v990_v59, %v997_v11 }
0x1552   :  { %v999_v33 = vmul.f32 1.442695, %v998_v30 }
0x1568   :  { %v523_v12 = vpop.xlane.xlu1 %522 }
0x1569   :  { %2593 = vlog2.f32 %v523_v12 }
0x156c   :  { %v1484_v13 = vpop.xlane.xlu1 %1483 }
0x156d   :  { %2595 = vlog2.f32 %v1484_v13 }
0x156e   :  { %2597 = vpow2.f32 %v999_v33 }
0x1570   :  { %v1979_v45 = vpop.permute.xlu1 %1978 }
0x1571   :  { %1981 = vst.msk [vmem:[%s3355_s12] sm:$0x1] %vm1971_vm3, %v1979_v45  ;;  %s1999_s12 = sshll.u32 %s2658_s8, 4  ;;  %s2000_s12 = int_to_ptr.vmem [resolvable:$true] %s1999_s12 }
0x1572   :  { %s2605_s24 = scalar_lea.vmem %s2000_s12, 64  ;;  %p2610_p1 = scmp.lt.s32.totalorder %s2000_s12, %s2000_s12 }
0x1573   :  { %v2594_v32 = vpop.eup %2593  ;;  %p2606_p0 = scmp.ne.s32.totalorder %s2000_s12, %s2605_s24  ;;  %p2611_p2 = scmp.lt.s32.totalorder %s2605_s24, %s2605_s24 }
0x1574   :  { %v525_v15 = vmul.f32 0.6931472, %v2594_v32 }
0x1575   :  { %p2612_p3 = por %p2611_p2, %p2610_p1 }
0x1576   :  { %v526_v16 = vsub.f32 %v518_v60, %v525_v15 }
0x1577   :  { %v2596_v17 = vpop.eup %2595  ;;  %p2613_p4 = pnand %p2612_p3, %p2606_p0 }
0x1578   :  { %527 = vst [vmem:[#allocation2] sm:$0x1] %v526_v16  ;;  %v1486_v18 = vmul.f32 0.6931472, %v2596_v17  ;;  %v2598_v42 = vpop.eup %2597 }
0x1579   :  { %v1001_v43 = vsel %vm120_vm2, %v2598_v42, 0.0 }
0x157a   :  { %v1487_v28 = vsub.f32 %v1479_v63, %v1486_v18 }
0x157c   :  { %1489 = vst [vmem:[#allocation2 + $0x2] sm:$0x1] %v1487_v28 }
0x15e8   :  { %v1951_v36 = vpop.f32.mrb[28].mxu1 }
0x15e9   :  { %v1952_v37 = vadd.f32 %v1951_v36, %v1889_v34  ;;  %v2418_v39 = vpop.f32.mrb[29].mxu1 }
0x15ea   :  { %v1954_v14 = vpop.f32.mrb[30].mxu1 }
0x15eb   :  { %v2419_v40 = vpop.f32.mrb[31].mxu1  ;;  %v1957_v41 = vsel %vm120_vm2, %v1952_v37, -inf }
0x15ec   :  { %1958 = vmax.xlane.f32.xlu0 %v1957_v41 }
0x15f0   :  { %1002 = vadd.xlane.f32.xlu0 %v1001_v43 }
0x1679   :  { %v1959_v49 = vpop.xlane.xlu0 %1958 }
0x167a   :  { %v1960_v50 = vsub.f32 %v1952_v37, %v1959_v49 }
0x167c   :  { %v1961_v19 = vmul.f32 1.442695, %v1960_v50 }
0x167d   :  { %v1003_v20 = vpop.xlane.xlu0 %1002 }
0x167e   :  { %2599 = vpow2.f32 %v1961_v19 }
0x167f   :  { %2601 = vlog2.f32 %v1003_v20 }
0x1688   :  { %v2600_v21 = vpop.eup %2599 }
0x1689   :  { %v2602_v22 = vpop.eup %2601  ;;  %v1963_v23 = vsel %vm120_vm2, %v2600_v21, 0.0 }
0x168a   :  { %v1005_v24 = vmul.f32 0.6931472, %v2602_v22  ;;  %1964 = vadd.xlane.f32.xlu0 %v1963_v23 }
0x168c   :  { %v1006_v25 = vsub.f32 %v998_v30, %v1005_v24 }
0x168e   :  { %1008 = vst [vmem:[#allocation2 + $0x1] sm:$0x1] %v1006_v25 }
0x168f   :  { %2616 = shalt.err (!%p2613_p4)
}
0x1690   :  { %s2617_s0 = scalar_lea.hbm %s3353_s10, 64 }
0x1691   :  { %p2618_p5 = scmp.ne.s32.totalorder %s3353_s10, %s2617_s0  ;;  %p2621_p6 = scmp.lt.u32.totalorder %s2617_s0, %s3353_s10 }
0x1693   :  { %p2623_p7 = pnand %p2621_p6, %p2618_p5 }
0x1695   :  { %2626 = shalt.err (!%p2623_p7)
}
0x1696   :  { %s2659_s1 = smov 16   ;;  %s2660_s28 = smov 1  }
0x1697   :  { %2005 = dma.vmem_to_hbm [thread:$0]  %s2000_s12, 64, %s3353_s10, [#allocation5], %s2659_s1, %s2659_s1, %s2660_s28  }
0x1698   :  { %s2661_s13 = smov [#allocation2]  }
0x1699   :  { %s1987_s14 = sshll.u32 %s2661_s13, 4  ;;  %s1988_s14 = int_to_ptr.vmem [resolvable:$true] %s1987_s14 }
0x169a   :  { %s2627_s3 = scalar_lea.vmem %s1988_s14, 64  ;;  %p2632_p9 = scmp.lt.s32.totalorder %s1988_s14, %s1988_s14 }
0x169b   :  { %p2628_p8 = scmp.ne.s32.totalorder %s1988_s14, %s2627_s3  ;;  %p2633_p10 = scmp.lt.s32.totalorder %s2627_s3, %s2627_s3 }
0x169d   :  { %p2634_p11 = por %p2633_p10, %p2632_p9 }
0x169f   :  { %p2635_p12 = pnand %p2634_p11, %p2628_p8 }
0x1717   :  { %v1965_v26 = vpop.xlane.xlu0 %1964 }
0x1718   :  { %2603 = vlog2.f32 %v1965_v26 }
0x1722   :  { %v2604_v51 = vpop.eup %2603 }
0x1723   :  { %v1967_v0 = vmul.f32 0.6931472, %v2604_v51 }
0x1725   :  { %v1968_v27 = vsub.f32 %v1960_v50, %v1967_v0 }
0x1727   :  { %1970 = vst [vmem:[#allocation2 + $0x3] sm:$0x1] %v1968_v27 }
0x1728   :  { %2638 = shalt.err (!%p2635_p12)
}
0x1729   :  { %s2639_s10 = scalar_lea.hbm %s3352_s9, 64 }
0x172a   :  { %p2640_p13 = scmp.ne.s32.totalorder %s3352_s9, %s2639_s10  ;;  %p2643_p0 = scmp.lt.u32.totalorder %s2639_s10, %s3352_s9 }
0x172c   :  { %p2645_p1 = pnand %p2643_p0, %p2640_p13 }
0x172e   :  { %2648 = shalt.err (!%p2645_p1)
}
0x172f   :  { %1993 = dma.vmem_to_hbm [thread:$0]  %s1988_s14, 64, %s3352_s9, [#allocation3], %s2659_s1, %s2659_s1, %s2660_s28  }
0x1730   :  { %2649 = dma.done.wait [#allocation3], 64  }
0x1731   :  { %2650 = vsyncadd [#allocation3], 4294967232 }
0x1732   :  { %2651 = dma.done.wait [#allocation5], 64  }
0x1733   :  { %2652 = vsyncadd [#allocation5], 4294967232 }
0x1734   :  { %2020 = vsyncpa [#allocation3], 1 }
0x1735   :  { %2021 = vsyncpa [#allocation5], 1 }

</bundles_post_ra>
